<compile_context>
chip_gen: v7x
topology: tpu7x:2x2x1
jax: 0.10.0
libtpu: 0.0.40
codegen_flags: <defaults>
</compile_context>

<pallas_src>
import functools

import jax
import jax.numpy as jnp
from jax.experimental import pallas as pl
from jax.experimental.pallas import tpu as pltpu


# ---------------------------------------------------------------------------
# Fused kernel: wavefronted GRU stack + classifier, one invocation
# ---------------------------------------------------------------------------
def make_fused_kernel(num_layers, T, B, H, d_pad):
    H3 = 3 * H

    def sigmoid(v):
        # exact logistic via a single tanh EUP push (avoids exp + reciprocal lowering)
        return 0.5 * jnp.tanh(0.5 * v) + 0.5

    def kernel(x_ref, w_ref, b_ref, o_ref):
        # ---- unpack packed parameter slabs (static, 8-aligned sublane slices) ----
        wih, whh, b_cat, bhn = [], [], [], []
        row = 0
        for l in range(num_layers):
            din = d_pad if l == 0 else H
            wih.append(w_ref[row:row + din, :H3])                 # (din, 3H)  [r|z|n]
            whh.append(w_ref[row + din:row + din + H, :H3])       # (H,   3H)  [r|z|n]
            row += din + H
            b_cat.append(b_ref[2 * l:2 * l + 1, :H3])             # (1, 3H) = [bir+bhr|biz+bhz|bin]
            bhn.append(b_ref[2 * l + 1:2 * l + 2, :H])            # (1, H)   (r-gated, kept separate)
        lin_w = w_ref[row:row + H, :]                             # (H, Cpad)
        lin_b = b_ref[2 * num_layers:2 * num_layers + 1, :]       # (1, Cpad)

        # ---- wavefront over (layer, time): dependent chain = T + L - 1 steps -----
        h = [jnp.zeros((B, H), jnp.float32) for _ in range(num_layers)]
        for s in range(T + num_layers - 1):
            # deepest layer first so h[l-1] still holds layer (l-1)'s step-(s-l) output
            for l in range(num_layers - 1, -1, -1):
                t = s - l
                if t < 0 or t >= T:
                    continue
                inp = x_ref[t] if l == 0 else h[l - 1]            # (B, din), whole-tile view
                xt = jnp.dot(inp, wih[l],
                             preferred_element_type=jnp.float32) + b_cat[l]   # (B, 3H)
                g = jnp.dot(h[l], whh[l],
                            preferred_element_type=jnp.float32)               # (B, 3H)
                rz = sigmoid(xt[:, :2 * H] + g[:, :2 * H])        # fused r|z, one EUP op
                r, z = rz[:, :H], rz[:, H:]
                n = jnp.tanh(xt[:, 2 * H:] + r * (g[:, 2 * H:] + bhn[l]))
                h[l] = (1.0 - z) * n + z * h[l]
                if l == num_layers - 1:
                    # classifier epilogue per step: lane-dense (B, Cpad) store
                    o_ref[t] = (jnp.dot(h[l], lin_w,
                                        preferred_element_type=jnp.float32)
                                + lin_b).astype(o_ref.dtype)
        # Dropout(p=0.2) layers are identity in eval mode.

    return kernel


# ---------------------------------------------------------------------------
# Raw (PyTorch-like) parameter construction
# ---------------------------------------------------------------------------
def init_params(key, input_size, hidden_size, layers, num_classes):
    ks = iter(jax.random.split(key, 4 * layers + 8))
    u = lambda k, shape, s: jax.random.uniform(k, shape, jnp.float32, -s, s)

    # BatchNorm1d(input_size) running stats + affine
    gamma = 1.0 + 0.1 * jax.random.normal(next(ks), (input_size,), jnp.float32)
    beta = 0.1 * jax.random.normal(next(ks), (input_size,), jnp.float32)
    r_mean = 0.05 * jax.random.normal(next(ks), (input_size,), jnp.float32)
    r_var = 1.0 + 0.1 * jax.random.uniform(next(ks), (input_size,), jnp.float32)

    s = 1.0 / float(hidden_size) ** 0.5
    gru = []
    for layer in range(layers):
        d_in = input_size if layer == 0 else hidden_size
        gru.append(dict(
            wih=u(next(ks), (3, d_in, hidden_size), s),           # gate order [r, z, n]
            whh=u(next(ks), (3, hidden_size, hidden_size), s),
            bih=u(next(ks), (3, 1, hidden_size), s),
            bhh=u(next(ks), (3, 1, hidden_size), s),
        ))

    lin_w = u(next(ks), (hidden_size, num_classes), s)
    lin_b = u(next(ks), (num_classes,), s)
    return dict(gamma=gamma, beta=beta, r_mean=r_mean, r_var=r_var,
                gru=gru, lin_w=lin_w, lin_b=lin_b)


# ---------------------------------------------------------------------------
# Wrapper-side folding + slab packing (exact, eval-mode semantics)
# ---------------------------------------------------------------------------
def prepare_fused_params(raw, lane=128, sublane=8):
    eps = 1e-5
    scale = raw['gamma'] / jnp.sqrt(raw['r_var'] + eps)           # BN eval: x*scale + shift
    shift = raw['beta'] - raw['r_mean'] * scale

    layers = len(raw['gru'])
    H = raw['gru'][0]['whh'].shape[-1]
    H3 = 3 * H
    d_in = raw['gru'][0]['wih'].shape[1]
    d_pad = -(-d_in // sublane) * sublane
    C = raw['lin_w'].shape[1]
    width = max(-(-H3 // lane) * lane, -(-C // lane) * lane)      # lane-dense slab/output width

    def pad(a, rows=None):
        r, c = a.shape
        rr = r if rows is None else rows
        return jnp.zeros((rr, width), jnp.float32).at[:r, :c].set(a.astype(jnp.float32))

    w_rows, b_rows = [], []
    for i, lw in enumerate(raw['gru']):
        wih = jnp.concatenate([lw['wih'][0], lw['wih'][1], lw['wih'][2]], axis=1)   # (din, 3H)
        whh = jnp.concatenate([lw['whh'][0], lw['whh'][1], lw['whh'][2]], axis=1)   # (H,   3H)
        bir, biz, bin_ = lw['bih'][0], lw['bih'][1], lw['bih'][2]
        bhr, bhz, bhn = lw['bhh'][0], lw['bhh'][1], lw['bhh'][2]
        b_cat = jnp.concatenate([bir + bhr, biz + bhz, bin_], axis=1)                # (1, 3H)
        if i == 0:
            # Fold eval-mode BatchNorm1d into the first layer's input projection:
            # (x*scale + shift) @ W = x @ (scale[:,None]*W) + shift @ W
            b_cat = b_cat + shift[None, :] @ wih
            wih = scale[:, None] * wih
            w_rows.append(pad(wih, rows=d_pad))      # pad feature rows to sublane multiple
        else:
            w_rows.append(pad(wih))
        w_rows.append(pad(whh))
        b_rows.append(pad(b_cat))
        b_rows.append(pad(bhn))
    w_rows.append(pad(raw['lin_w']))                 # classifier weights (H, width)
    b_rows.append(pad(raw['lin_b'][None, :]))        # classifier bias    (1, width)

    slabs = dict(wslab=jnp.concatenate(w_rows, axis=0),            # (Rtot, width)
                 bslab=jnp.concatenate(b_rows, axis=0))            # (2L+1, width)
    meta = dict(layers=layers, hidden=H, d_pad=d_pad)
    return slabs, meta


# ---------------------------------------------------------------------------
# Forward pass (eval-mode NeuralNet.forward), single fused pallas_call
# ---------------------------------------------------------------------------
@functools.partial(jax.jit, static_argnames=('layers', 'hidden', 'd_pad', 'num_classes'))
def neural_net_forward(x, wslab, bslab, *, layers, hidden, d_pad, num_classes):
    B, T, d_in = x.shape
    width = wslab.shape[1]

    # batch-first -> time-major + feature pad at the (tiny) HBM boundary
    x32 = x.astype(jnp.float32)
    xpad = jnp.zeros((B, T, d_pad), jnp.float32).at[..., :d_in].set(x32)
    x_tm = jnp.transpose(xpad, (1, 0, 2))                          # (T, B, d_pad)

    out_tm = pl.pallas_call(
        make_fused_kernel(layers, T, B, hidden, d_pad),
        out_shape=jax.ShapeDtypeStruct((T, B, width), jnp.float32),
        in_specs=[pl.BlockSpec(memory_space=pltpu.MemorySpace.VMEM)] * 3,
        out_specs=pl.BlockSpec(memory_space=pltpu.MemorySpace.VMEM),
    )(x_tm, wslab, bslab)

    # back to batch-first, strip lane padding
    return jnp.transpose(out_tm, (1, 0, 2))[..., :num_classes]


# ---------------------------------------------------------------------------
# Pure-JAX reference (eval-mode semantics) for correctness checking
# ---------------------------------------------------------------------------
def reference_forward(x, raw):
    eps = 1e-5
    scale = raw['gamma'] / jnp.sqrt(raw['r_var'] + eps)
    shift = raw['beta'] - raw['r_mean'] * scale
    h_seq = x.astype(jnp.float32) * scale + shift                  # BN over last (feature) dim
    B, T, _ = x.shape
    for lw in raw['gru']:
        H = lw['whh'].shape[-1]
        h = jnp.zeros((B, H), jnp.float32)
        outs = []
        for t in range(T):
            xt = h_seq[:, t, :]
            r = jax.nn.sigmoid(xt @ lw['wih'][0] + lw['bih'][0] + h @ lw['whh'][0] + lw['bhh'][0])
            z = jax.nn.sigmoid(xt @ lw['wih'][1] + lw['bih'][1] + h @ lw['whh'][1] + lw['bhh'][1])
            n = jnp.tanh(xt @ lw['wih'][2] + lw['bih'][2] + r * (h @ lw['whh'][2] + lw['bhh'][2]))
            h = (1.0 - z) * n + z * h
            outs.append(h)
        h_seq = jnp.stack(outs, axis=1)
    return h_seq @ raw['lin_w'] + raw['lin_b']


# ---------------------------------------------------------------------------
if __name__ == "__main__":
    BATCH, SEQ = 2, 8
    INPUT_SIZE, HIDDEN_SIZE, LAYERS, NUM_CLASSES = 4, 32, 2, 5

    key = jax.random.PRNGKey(0)
    k_x, k_p = jax.random.split(key)
    x = jax.random.normal(k_x, (BATCH, SEQ, INPUT_SIZE), jnp.float32)
    raw = init_params(k_p, INPUT_SIZE, HIDDEN_SIZE, LAYERS, NUM_CLASSES)
    slabs, meta = prepare_fused_params(raw)

    out = neural_net_forward(x, slabs['wslab'], slabs['bslab'],
                             layers=meta['layers'], hidden=meta['hidden'],
                             d_pad=meta['d_pad'], num_classes=NUM_CLASSES)
    out = jax.block_until_ready(out)

    assert out.shape == (BATCH, SEQ, NUM_CLASSES), out.shape
    assert bool(jnp.all(jnp.isfinite(out)))

    ref = reference_forward(x, raw)
    err = float(jnp.max(jnp.abs(ref - out)))
    assert err < 5e-3, f"mismatch vs pure-JAX reference: {err}"

    print("KERNEL_OK")
</pallas_src>

<mosaic_0001>
module attributes {stable_mosaic.version = 11 : i64} {
  func.func @kernel(%arg0: memref<8x2x8xf32, #tpu.memory_space<vmem>>, %arg1: memref<136x128xf32, #tpu.memory_space<vmem>>, %arg2: memref<5x128xf32, #tpu.memory_space<vmem>>, %arg3: memref<8x2x128xf32, #tpu.memory_space<vmem>>) attributes {dimension_semantics = [], scalar_prefetch = 0 : i64, scratch_operands = 0 : i64, tpu.core_type = #tpu.core_type<tc>} {
    %c0 = arith.constant 0 : index
    %c0_0 = arith.constant 0 : index
    %0 = vector.load %arg1[%c0, %c0_0] : memref<136x128xf32, #tpu.memory_space<vmem>>, vector<8x96xf32>
    %c8 = arith.constant 8 : index
    %c0_1 = arith.constant 0 : index
    %1 = vector.load %arg1[%c8, %c0_1] : memref<136x128xf32, #tpu.memory_space<vmem>>, vector<32x96xf32>
    %c0_2 = arith.constant 0 : index
    %c0_3 = arith.constant 0 : index
    %2 = vector.load %arg2[%c0_2, %c0_3] : memref<5x128xf32, #tpu.memory_space<vmem>>, vector<1x96xf32>
    %c1 = arith.constant 1 : index
    %c0_4 = arith.constant 0 : index
    %3 = vector.load %arg2[%c1, %c0_4] : memref<5x128xf32, #tpu.memory_space<vmem>>, vector<1x32xf32>
    %c40 = arith.constant 40 : index
    %c0_5 = arith.constant 0 : index
    %4 = vector.load %arg1[%c40, %c0_5] : memref<136x128xf32, #tpu.memory_space<vmem>>, vector<32x96xf32>
    %c72 = arith.constant 72 : index
    %c0_6 = arith.constant 0 : index
    %5 = vector.load %arg1[%c72, %c0_6] : memref<136x128xf32, #tpu.memory_space<vmem>>, vector<32x96xf32>
    %c2 = arith.constant 2 : index
    %c0_7 = arith.constant 0 : index
    %6 = vector.load %arg2[%c2, %c0_7] : memref<5x128xf32, #tpu.memory_space<vmem>>, vector<1x96xf32>
    %c3 = arith.constant 3 : index
    %c0_8 = arith.constant 0 : index
    %7 = vector.load %arg2[%c3, %c0_8] : memref<5x128xf32, #tpu.memory_space<vmem>>, vector<1x32xf32>
    %c104 = arith.constant 104 : index
    %c0_9 = arith.constant 0 : index
    %8 = vector.load %arg1[%c104, %c0_9] : memref<136x128xf32, #tpu.memory_space<vmem>>, vector<32x128xf32>
    %c4 = arith.constant 4 : index
    %c0_10 = arith.constant 0 : index
    %9 = vector.load %arg2[%c4, %c0_10] : memref<5x128xf32, #tpu.memory_space<vmem>>, vector<1x128xf32>
    %cst = arith.constant 0.000000e+00 : f32
    %10 = vector.broadcast %cst : f32 to vector<2x32xf32>
    %cst_11 = arith.constant 0.000000e+00 : f32
    %11 = vector.broadcast %cst_11 : f32 to vector<2x32xf32>
    %c0_12 = arith.constant 0 : index
    %c0_13 = arith.constant 0 : index
    %c0_14 = arith.constant 0 : index
    %12 = vector.load %arg0[%c0_12, %c0_13, %c0_14] : memref<8x2x8xf32, #tpu.memory_space<vmem>>, vector<1x2x8xf32>
    %13 = vector.shape_cast %12 : vector<1x2x8xf32> to vector<2x8xf32>
    %cst_15 = arith.constant dense<0.000000e+00> : vector<2x96xf32>
    %14 = tpu.matmul %13, %0, %cst_15 {dimension_numbers = #tpu.dot_dimension_numbers<[1], [0], [0], [1], [0, 0, 1, 1], [], []>} : vector<2x8xf32>, vector<8x96xf32>, vector<2x96xf32> -> vector<2x96xf32>
    %15 = vector.broadcast %2 : vector<1x96xf32> to vector<2x96xf32>
    %16 = arith.addf %14, %15 : vector<2x96xf32>
    %cst_16 = arith.constant dense<0.000000e+00> : vector<2x96xf32>
    %17 = tpu.matmul %10, %1, %cst_16 {dimension_numbers = #tpu.dot_dimension_numbers<[1], [0], [0], [1], [0, 0, 1, 1], [], []>} : vector<2x32xf32>, vector<32x96xf32>, vector<2x96xf32> -> vector<2x96xf32>
    %18 = vector.extract_strided_slice %16 {offsets = [0, 0], sizes = [2, 64], strides = [1, 1]} : vector<2x96xf32> to vector<2x64xf32>
    %19 = vector.extract_strided_slice %17 {offsets = [0, 0], sizes = [2, 64], strides = [1, 1]} : vector<2x96xf32> to vector<2x64xf32>
    %20 = arith.addf %18, %19 : vector<2x64xf32>
    %cst_17 = arith.constant 5.000000e-01 : f32
    %21 = vector.broadcast %cst_17 : f32 to vector<2x64xf32>
    %22 = arith.mulf %21, %20 : vector<2x64xf32>
    %23 = math.tanh %22 : vector<2x64xf32>
    %cst_18 = arith.constant 5.000000e-01 : f32
    %24 = vector.broadcast %cst_18 : f32 to vector<2x64xf32>
    %25 = arith.mulf %24, %23 : vector<2x64xf32>
    %cst_19 = arith.constant 5.000000e-01 : f32
    %26 = vector.broadcast %cst_19 : f32 to vector<2x64xf32>
    %27 = arith.addf %25, %26 : vector<2x64xf32>
    %28 = vector.extract_strided_slice %27 {offsets = [0, 0], sizes = [2, 32], strides = [1, 1]} : vector<2x64xf32> to vector<2x32xf32>
    %29 = vector.extract_strided_slice %27 {offsets = [0, 32], sizes = [2, 32], strides = [1, 1]} : vector<2x64xf32> to vector<2x32xf32>
    %30 = vector.extract_strided_slice %16 {offsets = [0, 64], sizes = [2, 32], strides = [1, 1]} : vector<2x96xf32> to vector<2x32xf32>
    %31 = vector.extract_strided_slice %17 {offsets = [0, 64], sizes = [2, 32], strides = [1, 1]} : vector<2x96xf32> to vector<2x32xf32>
    %32 = vector.broadcast %3 : vector<1x32xf32> to vector<2x32xf32>
    %33 = arith.addf %31, %32 : vector<2x32xf32>
    %34 = arith.mulf %28, %33 : vector<2x32xf32>
    %35 = arith.addf %30, %34 : vector<2x32xf32>
    %36 = math.tanh %35 : vector<2x32xf32>
    %cst_20 = arith.constant 1.000000e+00 : f32
    %37 = vector.broadcast %cst_20 : f32 to vector<2x32xf32>
    %38 = arith.subf %37, %29 : vector<2x32xf32>
    %39 = arith.mulf %38, %36 : vector<2x32xf32>
    %40 = arith.mulf %29, %10 : vector<2x32xf32>
    %41 = arith.addf %39, %40 : vector<2x32xf32>
    %cst_21 = arith.constant dense<0.000000e+00> : vector<2x96xf32>
    %42 = tpu.matmul %41, %4, %cst_21 {dimension_numbers = #tpu.dot_dimension_numbers<[1], [0], [0], [1], [0, 0, 1, 1], [], []>} : vector<2x32xf32>, vector<32x96xf32>, vector<2x96xf32> -> vector<2x96xf32>
    %43 = vector.broadcast %6 : vector<1x96xf32> to vector<2x96xf32>
    %44 = arith.addf %42, %43 : vector<2x96xf32>
    %cst_22 = arith.constant dense<0.000000e+00> : vector<2x96xf32>
    %45 = tpu.matmul %11, %5, %cst_22 {dimension_numbers = #tpu.dot_dimension_numbers<[1], [0], [0], [1], [0, 0, 1, 1], [], []>} : vector<2x32xf32>, vector<32x96xf32>, vector<2x96xf32> -> vector<2x96xf32>
    %46 = vector.extract_strided_slice %44 {offsets = [0, 0], sizes = [2, 64], strides = [1, 1]} : vector<2x96xf32> to vector<2x64xf32>
    %47 = vector.extract_strided_slice %45 {offsets = [0, 0], sizes = [2, 64], strides = [1, 1]} : vector<2x96xf32> to vector<2x64xf32>
    %48 = arith.addf %46, %47 : vector<2x64xf32>
    %cst_23 = arith.constant 5.000000e-01 : f32
    %49 = vector.broadcast %cst_23 : f32 to vector<2x64xf32>
    %50 = arith.mulf %49, %48 : vector<2x64xf32>
    %51 = math.tanh %50 : vector<2x64xf32>
    %cst_24 = arith.constant 5.000000e-01 : f32
    %52 = vector.broadcast %cst_24 : f32 to vector<2x64xf32>
    %53 = arith.mulf %52, %51 : vector<2x64xf32>
    %cst_25 = arith.constant 5.000000e-01 : f32
    %54 = vector.broadcast %cst_25 : f32 to vector<2x64xf32>
    %55 = arith.addf %53, %54 : vector<2x64xf32>
    %56 = vector.extract_strided_slice %55 {offsets = [0, 0], sizes = [2, 32], strides = [1, 1]} : vector<2x64xf32> to vector<2x32xf32>
    %57 = vector.extract_strided_slice %55 {offsets = [0, 32], sizes = [2, 32], strides = [1, 1]} : vector<2x64xf32> to vector<2x32xf32>
    %58 = vector.extract_strided_slice %44 {offsets = [0, 64], sizes = [2, 32], strides = [1, 1]} : vector<2x96xf32> to vector<2x32xf32>
    %59 = vector.extract_strided_slice %45 {offsets = [0, 64], sizes = [2, 32], strides = [1, 1]} : vector<2x96xf32> to vector<2x32xf32>
    %60 = vector.broadcast %7 : vector<1x32xf32> to vector<2x32xf32>
    %61 = arith.addf %59, %60 : vector<2x32xf32>
    %62 = arith.mulf %56, %61 : vector<2x32xf32>
    %63 = arith.addf %58, %62 : vector<2x32xf32>
    %64 = math.tanh %63 : vector<2x32xf32>
    %cst_26 = arith.constant 1.000000e+00 : f32
    %65 = vector.broadcast %cst_26 : f32 to vector<2x32xf32>
    %66 = arith.subf %65, %57 : vector<2x32xf32>
    %67 = arith.mulf %66, %64 : vector<2x32xf32>
    %68 = arith.mulf %57, %11 : vector<2x32xf32>
    %69 = arith.addf %67, %68 : vector<2x32xf32>
    %cst_27 = arith.constant dense<0.000000e+00> : vector<2x128xf32>
    %70 = tpu.matmul %69, %8, %cst_27 {dimension_numbers = #tpu.dot_dimension_numbers<[1], [0], [0], [1], [0, 0, 1, 1], [], []>} : vector<2x32xf32>, vector<32x128xf32>, vector<2x128xf32> -> vector<2x128xf32>
    %71 = vector.broadcast %9 : vector<1x128xf32> to vector<2x128xf32>
    %72 = arith.addf %70, %71 : vector<2x128xf32>
    %c0_28 = arith.constant 0 : index
    %c0_29 = arith.constant 0 : index
    %c0_30 = arith.constant 0 : index
    %73 = vector.load %arg3[%c0_28, %c0_29, %c0_30] : memref<8x2x128xf32, #tpu.memory_space<vmem>>, vector<1x2x128xf32>
    %74 = vector.shape_cast %73 : vector<1x2x128xf32> to vector<2x128xf32>
    %75 = vector.shape_cast %72 : vector<2x128xf32> to vector<1x2x128xf32>
    tpu.vector_store %arg3[%c0_28, %c0_29, %c0_30], %75 {strides = array<i32>} : memref<8x2x128xf32, #tpu.memory_space<vmem>>, vector<1x2x128xf32>,
    %c1_31 = arith.constant 1 : index
    %c0_32 = arith.constant 0 : index
    %c0_33 = arith.constant 0 : index
    %76 = vector.load %arg0[%c1_31, %c0_32, %c0_33] : memref<8x2x8xf32, #tpu.memory_space<vmem>>, vector<1x2x8xf32>
    %77 = vector.shape_cast %76 : vector<1x2x8xf32> to vector<2x8xf32>
    %cst_34 = arith.constant dense<0.000000e+00> : vector<2x96xf32>
    %78 = tpu.matmul %77, %0, %cst_34 {dimension_numbers = #tpu.dot_dimension_numbers<[1], [0], [0], [1], [0, 0, 1, 1], [], []>} : vector<2x8xf32>, vector<8x96xf32>, vector<2x96xf32> -> vector<2x96xf32>
    %79 = vector.broadcast %2 : vector<1x96xf32> to vector<2x96xf32>
    %80 = arith.addf %78, %79 : vector<2x96xf32>
    %cst_35 = arith.constant dense<0.000000e+00> : vector<2x96xf32>
    %81 = tpu.matmul %41, %1, %cst_35 {dimension_numbers = #tpu.dot_dimension_numbers<[1], [0], [0], [1], [0, 0, 1, 1], [], []>} : vector<2x32xf32>, vector<32x96xf32>, vector<2x96xf32> -> vector<2x96xf32>
    %82 = vector.extract_strided_slice %80 {offsets = [0, 0], sizes = [2, 64], strides = [1, 1]} : vector<2x96xf32> to vector<2x64xf32>
    %83 = vector.extract_strided_slice %81 {offsets = [0, 0], sizes = [2, 64], strides = [1, 1]} : vector<2x96xf32> to vector<2x64xf32>
    %84 = arith.addf %82, %83 : vector<2x64xf32>
    %cst_36 = arith.constant 5.000000e-01 : f32
    %85 = vector.broadcast %cst_36 : f32 to vector<2x64xf32>
    %86 = arith.mulf %85, %84 : vector<2x64xf32>
    %87 = math.tanh %86 : vector<2x64xf32>
    %cst_37 = arith.constant 5.000000e-01 : f32
    %88 = vector.broadcast %cst_37 : f32 to vector<2x64xf32>
    %89 = arith.mulf %88, %87 : vector<2x64xf32>
    %cst_38 = arith.constant 5.000000e-01 : f32
    %90 = vector.broadcast %cst_38 : f32 to vector<2x64xf32>
    %91 = arith.addf %89, %90 : vector<2x64xf32>
    %92 = vector.extract_strided_slice %91 {offsets = [0, 0], sizes = [2, 32], strides = [1, 1]} : vector<2x64xf32> to vector<2x32xf32>
    %93 = vector.extract_strided_slice %91 {offsets = [0, 32], sizes = [2, 32], strides = [1, 1]} : vector<2x64xf32> to vector<2x32xf32>
    %94 = vector.extract_strided_slice %80 {offsets = [0, 64], sizes = [2, 32], strides = [1, 1]} : vector<2x96xf32> to vector<2x32xf32>
    %95 = vector.extract_strided_slice %81 {offsets = [0, 64], sizes = [2, 32], strides = [1, 1]} : vector<2x96xf32> to vector<2x32xf32>
    %96 = vector.broadcast %3 : vector<1x32xf32> to vector<2x32xf32>
    %97 = arith.addf %95, %96 : vector<2x32xf32>
    %98 = arith.mulf %92, %97 : vector<2x32xf32>
    %99 = arith.addf %94, %98 : vector<2x32xf32>
    %100 = math.tanh %99 : vector<2x32xf32>
    %cst_39 = arith.constant 1.000000e+00 : f32
    %101 = vector.broadcast %cst_39 : f32 to vector<2x32xf32>
    %102 = arith.subf %101, %93 : vector<2x32xf32>
    %103 = arith.mulf %102, %100 : vector<2x32xf32>
    %104 = arith.mulf %93, %41 : vector<2x32xf32>
    %105 = arith.addf %103, %104 : vector<2x32xf32>
    %cst_40 = arith.constant dense<0.000000e+00> : vector<2x96xf32>
    %106 = tpu.matmul %105, %4, %cst_40 {dimension_numbers = #tpu.dot_dimension_numbers<[1], [0], [0], [1], [0, 0, 1, 1], [], []>} : vector<2x32xf32>, vector<32x96xf32>, vector<2x96xf32> -> vector<2x96xf32>
    %107 = vector.broadcast %6 : vector<1x96xf32> to vector<2x96xf32>
    %108 = arith.addf %106, %107 : vector<2x96xf32>
    %cst_41 = arith.constant dense<0.000000e+00> : vector<2x96xf32>
    %109 = tpu.matmul %69, %5, %cst_41 {dimension_numbers = #tpu.dot_dimension_numbers<[1], [0], [0], [1], [0, 0, 1, 1], [], []>} : vector<2x32xf32>, vector<32x96xf32>, vector<2x96xf32> -> vector<2x96xf32>
    %110 = vector.extract_strided_slice %108 {offsets = [0, 0], sizes = [2, 64], strides = [1, 1]} : vector<2x96xf32> to vector<2x64xf32>
    %111 = vector.extract_strided_slice %109 {offsets = [0, 0], sizes = [2, 64], strides = [1, 1]} : vector<2x96xf32> to vector<2x64xf32>
    %112 = arith.addf %110, %111 : vector<2x64xf32>
    %cst_42 = arith.constant 5.000000e-01 : f32
    %113 = vector.broadcast %cst_42 : f32 to vector<2x64xf32>
    %114 = arith.mulf %113, %112 : vector<2x64xf32>
    %115 = math.tanh %114 : vector<2x64xf32>
    %cst_43 = arith.constant 5.000000e-01 : f32
    %116 = vector.broadcast %cst_43 : f32 to vector<2x64xf32>
    %117 = arith.mulf %116, %115 : vector<2x64xf32>
    %cst_44 = arith.constant 5.000000e-01 : f32
    %118 = vector.broadcast %cst_44 : f32 to vector<2x64xf32>
    %119 = arith.addf %117, %118 : vector<2x64xf32>
    %120 = vector.extract_strided_slice %119 {offsets = [0, 0], sizes = [2, 32], strides = [1, 1]} : vector<2x64xf32> to vector<2x32xf32>
    %121 = vector.extract_strided_slice %119 {offsets = [0, 32], sizes = [2, 32], strides = [1, 1]} : vector<2x64xf32> to vector<2x32xf32>
    %122 = vector.extract_strided_slice %108 {offsets = [0, 64], sizes = [2, 32], strides = [1, 1]} : vector<2x96xf32> to vector<2x32xf32>
    %123 = vector.extract_strided_slice %109 {offsets = [0, 64], sizes = [2, 32], strides = [1, 1]} : vector<2x96xf32> to vector<2x32xf32>
    %124 = vector.broadcast %7 : vector<1x32xf32> to vector<2x32xf32>
    %125 = arith.addf %123, %124 : vector<2x32xf32>
    %126 = arith.mulf %120, %125 : vector<2x32xf32>
    %127 = arith.addf %122, %126 : vector<2x32xf32>
    %128 = math.tanh %127 : vector<2x32xf32>
    %cst_45 = arith.constant 1.000000e+00 : f32
    %129 = vector.broadcast %cst_45 : f32 to vector<2x32xf32>
    %130 = arith.subf %129, %121 : vector<2x32xf32>
    %131 = arith.mulf %130, %128 : vector<2x32xf32>
    %132 = arith.mulf %121, %69 : vector<2x32xf32>
    %133 = arith.addf %131, %132 : vector<2x32xf32>
    %cst_46 = arith.constant dense<0.000000e+00> : vector<2x128xf32>
    %134 = tpu.matmul %133, %8, %cst_46 {dimension_numbers = #tpu.dot_dimension_numbers<[1], [0], [0], [1], [0, 0, 1, 1], [], []>} : vector<2x32xf32>, vector<32x128xf32>, vector<2x128xf32> -> vector<2x128xf32>
    %135 = vector.broadcast %9 : vector<1x128xf32> to vector<2x128xf32>
    %136 = arith.addf %134, %135 : vector<2x128xf32>
    %c1_47 = arith.constant 1 : index
    %c0_48 = arith.constant 0 : index
    %c0_49 = arith.constant 0 : index
    %137 = vector.load %arg3[%c1_47, %c0_48, %c0_49] : memref<8x2x128xf32, #tpu.memory_space<vmem>>, vector<1x2x128xf32>
    %138 = vector.shape_cast %137 : vector<1x2x128xf32> to vector<2x128xf32>
    %139 = vector.shape_cast %136 : vector<2x128xf32> to vector<1x2x128xf32>
    tpu.vector_store %arg3[%c1_47, %c0_48, %c0_49], %139 {strides = array<i32>} : memref<8x2x128xf32, #tpu.memory_space<vmem>>, vector<1x2x128xf32>,
    %c2_50 = arith.constant 2 : index
    %c0_51 = arith.constant 0 : index
    %c0_52 = arith.constant 0 : index
    %140 = vector.load %arg0[%c2_50, %c0_51, %c0_52] : memref<8x2x8xf32, #tpu.memory_space<vmem>>, vector<1x2x8xf32>
    %141 = vector.shape_cast %140 : vector<1x2x8xf32> to vector<2x8xf32>
    %cst_53 = arith.constant dense<0.000000e+00> : vector<2x96xf32>
    %142 = tpu.matmul %141, %0, %cst_53 {dimension_numbers = #tpu.dot_dimension_numbers<[1], [0], [0], [1], [0, 0, 1, 1], [], []>} : vector<2x8xf32>, vector<8x96xf32>, vector<2x96xf32> -> vector<2x96xf32>
    %143 = vector.broadcast %2 : vector<1x96xf32> to vector<2x96xf32>
    %144 = arith.addf %142, %143 : vector<2x96xf32>
    %cst_54 = arith.constant dense<0.000000e+00> : vector<2x96xf32>
    %145 = tpu.matmul %105, %1, %cst_54 {dimension_numbers = #tpu.dot_dimension_numbers<[1], [0], [0], [1], [0, 0, 1, 1], [], []>} : vector<2x32xf32>, vector<32x96xf32>, vector<2x96xf32> -> vector<2x96xf32>
    %146 = vector.extract_strided_slice %144 {offsets = [0, 0], sizes = [2, 64], strides = [1, 1]} : vector<2x96xf32> to vector<2x64xf32>
    %147 = vector.extract_strided_slice %145 {offsets = [0, 0], sizes = [2, 64], strides = [1, 1]} : vector<2x96xf32> to vector<2x64xf32>
    %148 = arith.addf %146, %147 : vector<2x64xf32>
    %cst_55 = arith.constant 5.000000e-01 : f32
    %149 = vector.broadcast %cst_55 : f32 to vector<2x64xf32>
    %150 = arith.mulf %149, %148 : vector<2x64xf32>
    %151 = math.tanh %150 : vector<2x64xf32>
    %cst_56 = arith.constant 5.000000e-01 : f32
    %152 = vector.broadcast %cst_56 : f32 to vector<2x64xf32>
    %153 = arith.mulf %152, %151 : vector<2x64xf32>
    %cst_57 = arith.constant 5.000000e-01 : f32
    %154 = vector.broadcast %cst_57 : f32 to vector<2x64xf32>
    %155 = arith.addf %153, %154 : vector<2x64xf32>
    %156 = vector.extract_strided_slice %155 {offsets = [0, 0], sizes = [2, 32], strides = [1, 1]} : vector<2x64xf32> to vector<2x32xf32>
    %157 = vector.extract_strided_slice %155 {offsets = [0, 32], sizes = [2, 32], strides = [1, 1]} : vector<2x64xf32> to vector<2x32xf32>
    %158 = vector.extract_strided_slice %144 {offsets = [0, 64], sizes = [2, 32], strides = [1, 1]} : vector<2x96xf32> to vector<2x32xf32>
    %159 = vector.extract_strided_slice %145 {offsets = [0, 64], sizes = [2, 32], strides = [1, 1]} : vector<2x96xf32> to vector<2x32xf32>
    %160 = vector.broadcast %3 : vector<1x32xf32> to vector<2x32xf32>
    %161 = arith.addf %159, %160 : vector<2x32xf32>
    %162 = arith.mulf %156, %161 : vector<2x32xf32>
    %163 = arith.addf %158, %162 : vector<2x32xf32>
    %164 = math.tanh %163 : vector<2x32xf32>
    %cst_58 = arith.constant 1.000000e+00 : f32
    %165 = vector.broadcast %cst_58 : f32 to vector<2x32xf32>
    %166 = arith.subf %165, %157 : vector<2x32xf32>
    %167 = arith.mulf %166, %164 : vector<2x32xf32>
    %168 = arith.mulf %157, %105 : vector<2x32xf32>
    %169 = arith.addf %167, %168 : vector<2x32xf32>
    %cst_59 = arith.constant dense<0.000000e+00> : vector<2x96xf32>
    %170 = tpu.matmul %169, %4, %cst_59 {dimension_numbers = #tpu.dot_dimension_numbers<[1], [0], [0], [1], [0, 0, 1, 1], [], []>} : vector<2x32xf32>, vector<32x96xf32>, vector<2x96xf32> -> vector<2x96xf32>
    %171 = vector.broadcast %6 : vector<1x96xf32> to vector<2x96xf32>
    %172 = arith.addf %170, %171 : vector<2x96xf32>
    %cst_60 = arith.constant dense<0.000000e+00> : vector<2x96xf32>
    %173 = tpu.matmul %133, %5, %cst_60 {dimension_numbers = #tpu.dot_dimension_numbers<[1], [0], [0], [1], [0, 0, 1, 1], [], []>} : vector<2x32xf32>, vector<32x96xf32>, vector<2x96xf32> -> vector<2x96xf32>
    %174 = vector.extract_strided_slice %172 {offsets = [0, 0], sizes = [2, 64], strides = [1, 1]} : vector<2x96xf32> to vector<2x64xf32>
    %175 = vector.extract_strided_slice %173 {offsets = [0, 0], sizes = [2, 64], strides = [1, 1]} : vector<2x96xf32> to vector<2x64xf32>
    %176 = arith.addf %174, %175 : vector<2x64xf32>
    %cst_61 = arith.constant 5.000000e-01 : f32
    %177 = vector.broadcast %cst_61 : f32 to vector<2x64xf32>
    %178 = arith.mulf %177, %176 : vector<2x64xf32>
    %179 = math.tanh %178 : vector<2x64xf32>
    %cst_62 = arith.constant 5.000000e-01 : f32
    %180 = vector.broadcast %cst_62 : f32 to vector<2x64xf32>
    %181 = arith.mulf %180, %179 : vector<2x64xf32>
    %cst_63 = arith.constant 5.000000e-01 : f32
    %182 = vector.broadcast %cst_63 : f32 to vector<2x64xf32>
    %183 = arith.addf %181, %182 : vector<2x64xf32>
    %184 = vector.extract_strided_slice %183 {offsets = [0, 0], sizes = [2, 32], strides = [1, 1]} : vector<2x64xf32> to vector<2x32xf32>
    %185 = vector.extract_strided_slice %183 {offsets = [0, 32], sizes = [2, 32], strides = [1, 1]} : vector<2x64xf32> to vector<2x32xf32>
    %186 = vector.extract_strided_slice %172 {offsets = [0, 64], sizes = [2, 32], strides = [1, 1]} : vector<2x96xf32> to vector<2x32xf32>
    %187 = vector.extract_strided_slice %173 {offsets = [0, 64], sizes = [2, 32], strides = [1, 1]} : vector<2x96xf32> to vector<2x32xf32>
    %188 = vector.broadcast %7 : vector<1x32xf32> to vector<2x32xf32>
    %189 = arith.addf %187, %188 : vector<2x32xf32>
    %190 = arith.mulf %184, %189 : vector<2x32xf32>
    %191 = arith.addf %186, %190 : vector<2x32xf32>
    %192 = math.tanh %191 : vector<2x32xf32>
    %cst_64 = arith.constant 1.000000e+00 : f32
    %193 = vector.broadcast %cst_64 : f32 to vector<2x32xf32>
    %194 = arith.subf %193, %185 : vector<2x32xf32>
    %195 = arith.mulf %194, %192 : vector<2x32xf32>
    %196 = arith.mulf %185, %133 : vector<2x32xf32>
    %197 = arith.addf %195, %196 : vector<2x32xf32>
    %cst_65 = arith.constant dense<0.000000e+00> : vector<2x128xf32>
    %198 = tpu.matmul %197, %8, %cst_65 {dimension_numbers = #tpu.dot_dimension_numbers<[1], [0], [0], [1], [0, 0, 1, 1], [], []>} : vector<2x32xf32>, vector<32x128xf32>, vector<2x128xf32> -> vector<2x128xf32>
    %199 = vector.broadcast %9 : vector<1x128xf32> to vector<2x128xf32>
    %200 = arith.addf %198, %199 : vector<2x128xf32>
    %c2_66 = arith.constant 2 : index
    %c0_67 = arith.constant 0 : index
    %c0_68 = arith.constant 0 : index
    %201 = vector.load %arg3[%c2_66, %c0_67, %c0_68] : memref<8x2x128xf32, #tpu.memory_space<vmem>>, vector<1x2x128xf32>
    %202 = vector.shape_cast %201 : vector<1x2x128xf32> to vector<2x128xf32>
    %203 = vector.shape_cast %200 : vector<2x128xf32> to vector<1x2x128xf32>
    tpu.vector_store %arg3[%c2_66, %c0_67, %c0_68], %203 {strides = array<i32>} : memref<8x2x128xf32, #tpu.memory_space<vmem>>, vector<1x2x128xf32>,
    %c3_69 = arith.constant 3 : index
    %c0_70 = arith.constant 0 : index
    %c0_71 = arith.constant 0 : index
    %204 = vector.load %arg0[%c3_69, %c0_70, %c0_71] : memref<8x2x8xf32, #tpu.memory_space<vmem>>, vector<1x2x8xf32>
    %205 = vector.shape_cast %204 : vector<1x2x8xf32> to vector<2x8xf32>
    %cst_72 = arith.constant dense<0.000000e+00> : vector<2x96xf32>
    %206 = tpu.matmul %205, %0, %cst_72 {dimension_numbers = #tpu.dot_dimension_numbers<[1], [0], [0], [1], [0, 0, 1, 1], [], []>} : vector<2x8xf32>, vector<8x96xf32>, vector<2x96xf32> -> vector<2x96xf32>
    %207 = vector.broadcast %2 : vector<1x96xf32> to vector<2x96xf32>
    %208 = arith.addf %206, %207 : vector<2x96xf32>
    %cst_73 = arith.constant dense<0.000000e+00> : vector<2x96xf32>
    %209 = tpu.matmul %169, %1, %cst_73 {dimension_numbers = #tpu.dot_dimension_numbers<[1], [0], [0], [1], [0, 0, 1, 1], [], []>} : vector<2x32xf32>, vector<32x96xf32>, vector<2x96xf32> -> vector<2x96xf32>
    %210 = vector.extract_strided_slice %208 {offsets = [0, 0], sizes = [2, 64], strides = [1, 1]} : vector<2x96xf32> to vector<2x64xf32>
    %211 = vector.extract_strided_slice %209 {offsets = [0, 0], sizes = [2, 64], strides = [1, 1]} : vector<2x96xf32> to vector<2x64xf32>
    %212 = arith.addf %210, %211 : vector<2x64xf32>
    %cst_74 = arith.constant 5.000000e-01 : f32
    %213 = vector.broadcast %cst_74 : f32 to vector<2x64xf32>
    %214 = arith.mulf %213, %212 : vector<2x64xf32>
    %215 = math.tanh %214 : vector<2x64xf32>
    %cst_75 = arith.constant 5.000000e-01 : f32
    %216 = vector.broadcast %cst_75 : f32 to vector<2x64xf32>
    %217 = arith.mulf %216, %215 : vector<2x64xf32>
    %cst_76 = arith.constant 5.000000e-01 : f32
    %218 = vector.broadcast %cst_76 : f32 to vector<2x64xf32>
    %219 = arith.addf %217, %218 : vector<2x64xf32>
    %220 = vector.extract_strided_slice %219 {offsets = [0, 0], sizes = [2, 32], strides = [1, 1]} : vector<2x64xf32> to vector<2x32xf32>
    %221 = vector.extract_strided_slice %219 {offsets = [0, 32], sizes = [2, 32], strides = [1, 1]} : vector<2x64xf32> to vector<2x32xf32>
    %222 = vector.extract_strided_slice %208 {offsets = [0, 64], sizes = [2, 32], strides = [1, 1]} : vector<2x96xf32> to vector<2x32xf32>
    %223 = vector.extract_strided_slice %209 {offsets = [0, 64], sizes = [2, 32], strides = [1, 1]} : vector<2x96xf32> to vector<2x32xf32>
    %224 = vector.broadcast %3 : vector<1x32xf32> to vector<2x32xf32>
    %225 = arith.addf %223, %224 : vector<2x32xf32>
    %226 = arith.mulf %220, %225 : vector<2x32xf32>
    %227 = arith.addf %222, %226 : vector<2x32xf32>
    %228 = math.tanh %227 : vector<2x32xf32>
    %cst_77 = arith.constant 1.000000e+00 : f32
    %229 = vector.broadcast %cst_77 : f32 to vector<2x32xf32>
    %230 = arith.subf %229, %221 : vector<2x32xf32>
    %231 = arith.mulf %230, %228 : vector<2x32xf32>
    %232 = arith.mulf %221, %169 : vector<2x32xf32>
    %233 = arith.addf %231, %232 : vector<2x32xf32>
    %cst_78 = arith.constant dense<0.000000e+00> : vector<2x96xf32>
    %234 = tpu.matmul %233, %4, %cst_78 {dimension_numbers = #tpu.dot_dimension_numbers<[1], [0], [0], [1], [0, 0, 1, 1], [], []>} : vector<2x32xf32>, vector<32x96xf32>, vector<2x96xf32> -> vector<2x96xf32>
    %235 = vector.broadcast %6 : vector<1x96xf32> to vector<2x96xf32>
    %236 = arith.addf %234, %235 : vector<2x96xf32>
    %cst_79 = arith.constant dense<0.000000e+00> : vector<2x96xf32>
    %237 = tpu.matmul %197, %5, %cst_79 {dimension_numbers = #tpu.dot_dimension_numbers<[1], [0], [0], [1], [0, 0, 1, 1], [], []>} : vector<2x32xf32>, vector<32x96xf32>, vector<2x96xf32> -> vector<2x96xf32>
    %238 = vector.extract_strided_slice %236 {offsets = [0, 0], sizes = [2, 64], strides = [1, 1]} : vector<2x96xf32> to vector<2x64xf32>
    %239 = vector.extract_strided_slice %237 {offsets = [0, 0], sizes = [2, 64], strides = [1, 1]} : vector<2x96xf32> to vector<2x64xf32>
    %240 = arith.addf %238, %239 : vector<2x64xf32>
    %cst_80 = arith.constant 5.000000e-01 : f32
    %241 = vector.broadcast %cst_80 : f32 to vector<2x64xf32>
    %242 = arith.mulf %241, %240 : vector<2x64xf32>
    %243 = math.tanh %242 : vector<2x64xf32>
    %cst_81 = arith.constant 5.000000e-01 : f32
    %244 = vector.broadcast %cst_81 : f32 to vector<2x64xf32>
    %245 = arith.mulf %244, %243 : vector<2x64xf32>
    %cst_82 = arith.constant 5.000000e-01 : f32
    %246 = vector.broadcast %cst_82 : f32 to vector<2x64xf32>
    %247 = arith.addf %245, %246 : vector<2x64xf32>
    %248 = vector.extract_strided_slice %247 {offsets = [0, 0], sizes = [2, 32], strides = [1, 1]} : vector<2x64xf32> to vector<2x32xf32>
    %249 = vector.extract_strided_slice %247 {offsets = [0, 32], sizes = [2, 32], strides = [1, 1]} : vector<2x64xf32> to vector<2x32xf32>
    %250 = vector.extract_strided_slice %236 {offsets = [0, 64], sizes = [2, 32], strides = [1, 1]} : vector<2x96xf32> to vector<2x32xf32>
    %251 = vector.extract_strided_slice %237 {offsets = [0, 64], sizes = [2, 32], strides = [1, 1]} : vector<2x96xf32> to vector<2x32xf32>
    %252 = vector.broadcast %7 : vector<1x32xf32> to vector<2x32xf32>
    %253 = arith.addf %251, %252 : vector<2x32xf32>
    %254 = arith.mulf %248, %253 : vector<2x32xf32>
    %255 = arith.addf %250, %254 : vector<2x32xf32>
    %256 = math.tanh %255 : vector<2x32xf32>
    %cst_83 = arith.constant 1.000000e+00 : f32
    %257 = vector.broadcast %cst_83 : f32 to vector<2x32xf32>
    %258 = arith.subf %257, %249 : vector<2x32xf32>
    %259 = arith.mulf %258, %256 : vector<2x32xf32>
    %260 = arith.mulf %249, %197 : vector<2x32xf32>
    %261 = arith.addf %259, %260 : vector<2x32xf32>
    %cst_84 = arith.constant dense<0.000000e+00> : vector<2x128xf32>
    %262 = tpu.matmul %261, %8, %cst_84 {dimension_numbers = #tpu.dot_dimension_numbers<[1], [0], [0], [1], [0, 0, 1, 1], [], []>} : vector<2x32xf32>, vector<32x128xf32>, vector<2x128xf32> -> vector<2x128xf32>
    %263 = vector.broadcast %9 : vector<1x128xf32> to vector<2x128xf32>
    %264 = arith.addf %262, %263 : vector<2x128xf32>
    %c3_85 = arith.constant 3 : index
    %c0_86 = arith.constant 0 : index
    %c0_87 = arith.constant 0 : index
    %265 = vector.load %arg3[%c3_85, %c0_86, %c0_87] : memref<8x2x128xf32, #tpu.memory_space<vmem>>, vector<1x2x128xf32>
    %266 = vector.shape_cast %265 : vector<1x2x128xf32> to vector<2x128xf32>
    %267 = vector.shape_cast %264 : vector<2x128xf32> to vector<1x2x128xf32>
    tpu.vector_store %arg3[%c3_85, %c0_86, %c0_87], %267 {strides = array<i32>} : memref<8x2x128xf32, #tpu.memory_space<vmem>>, vector<1x2x128xf32>,
    %c4_88 = arith.constant 4 : index
    %c0_89 = arith.constant 0 : index
    %c0_90 = arith.constant 0 : index
    %268 = vector.load %arg0[%c4_88, %c0_89, %c0_90] : memref<8x2x8xf32, #tpu.memory_space<vmem>>, vector<1x2x8xf32>
    %269 = vector.shape_cast %268 : vector<1x2x8xf32> to vector<2x8xf32>
    %cst_91 = arith.constant dense<0.000000e+00> : vector<2x96xf32>
    %270 = tpu.matmul %269, %0, %cst_91 {dimension_numbers = #tpu.dot_dimension_numbers<[1], [0], [0], [1], [0, 0, 1, 1], [], []>} : vector<2x8xf32>, vector<8x96xf32>, vector<2x96xf32> -> vector<2x96xf32>
    %271 = vector.broadcast %2 : vector<1x96xf32> to vector<2x96xf32>
    %272 = arith.addf %270, %271 : vector<2x96xf32>
    %cst_92 = arith.constant dense<0.000000e+00> : vector<2x96xf32>
    %273 = tpu.matmul %233, %1, %cst_92 {dimension_numbers = #tpu.dot_dimension_numbers<[1], [0], [0], [1], [0, 0, 1, 1], [], []>} : vector<2x32xf32>, vector<32x96xf32>, vector<2x96xf32> -> vector<2x96xf32>
    %274 = vector.extract_strided_slice %272 {offsets = [0, 0], sizes = [2, 64], strides = [1, 1]} : vector<2x96xf32> to vector<2x64xf32>
    %275 = vector.extract_strided_slice %273 {offsets = [0, 0], sizes = [2, 64], strides = [1, 1]} : vector<2x96xf32> to vector<2x64xf32>
    %276 = arith.addf %274, %275 : vector<2x64xf32>
    %cst_93 = arith.constant 5.000000e-01 : f32
    %277 = vector.broadcast %cst_93 : f32 to vector<2x64xf32>
    %278 = arith.mulf %277, %276 : vector<2x64xf32>
    %279 = math.tanh %278 : vector<2x64xf32>
    %cst_94 = arith.constant 5.000000e-01 : f32
    %280 = vector.broadcast %cst_94 : f32 to vector<2x64xf32>
    %281 = arith.mulf %280, %279 : vector<2x64xf32>
    %cst_95 = arith.constant 5.000000e-01 : f32
    %282 = vector.broadcast %cst_95 : f32 to vector<2x64xf32>
    %283 = arith.addf %281, %282 : vector<2x64xf32>
    %284 = vector.extract_strided_slice %283 {offsets = [0, 0], sizes = [2, 32], strides = [1, 1]} : vector<2x64xf32> to vector<2x32xf32>
    %285 = vector.extract_strided_slice %283 {offsets = [0, 32], sizes = [2, 32], strides = [1, 1]} : vector<2x64xf32> to vector<2x32xf32>
    %286 = vector.extract_strided_slice %272 {offsets = [0, 64], sizes = [2, 32], strides = [1, 1]} : vector<2x96xf32> to vector<2x32xf32>
    %287 = vector.extract_strided_slice %273 {offsets = [0, 64], sizes = [2, 32], strides = [1, 1]} : vector<2x96xf32> to vector<2x32xf32>
    %288 = vector.broadcast %3 : vector<1x32xf32> to vector<2x32xf32>
    %289 = arith.addf %287, %288 : vector<2x32xf32>
    %290 = arith.mulf %284, %289 : vector<2x32xf32>
    %291 = arith.addf %286, %290 : vector<2x32xf32>
    %292 = math.tanh %291 : vector<2x32xf32>
    %cst_96 = arith.constant 1.000000e+00 : f32
    %293 = vector.broadcast %cst_96 : f32 to vector<2x32xf32>
    %294 = arith.subf %293, %285 : vector<2x32xf32>
    %295 = arith.mulf %294, %292 : vector<2x32xf32>
    %296 = arith.mulf %285, %233 : vector<2x32xf32>
    %297 = arith.addf %295, %296 : vector<2x32xf32>
    %cst_97 = arith.constant dense<0.000000e+00> : vector<2x96xf32>
    %298 = tpu.matmul %297, %4, %cst_97 {dimension_numbers = #tpu.dot_dimension_numbers<[1], [0], [0], [1], [0, 0, 1, 1], [], []>} : vector<2x32xf32>, vector<32x96xf32>, vector<2x96xf32> -> vector<2x96xf32>
    %299 = vector.broadcast %6 : vector<1x96xf32> to vector<2x96xf32>
    %300 = arith.addf %298, %299 : vector<2x96xf32>
    %cst_98 = arith.constant dense<0.000000e+00> : vector<2x96xf32>
    %301 = tpu.matmul %261, %5, %cst_98 {dimension_numbers = #tpu.dot_dimension_numbers<[1], [0], [0], [1], [0, 0, 1, 1], [], []>} : vector<2x32xf32>, vector<32x96xf32>, vector<2x96xf32> -> vector<2x96xf32>
    %302 = vector.extract_strided_slice %300 {offsets = [0, 0], sizes = [2, 64], strides = [1, 1]} : vector<2x96xf32> to vector<2x64xf32>
    %303 = vector.extract_strided_slice %301 {offsets = [0, 0], sizes = [2, 64], strides = [1, 1]} : vector<2x96xf32> to vector<2x64xf32>
    %304 = arith.addf %302, %303 : vector<2x64xf32>
    %cst_99 = arith.constant 5.000000e-01 : f32
    %305 = vector.broadcast %cst_99 : f32 to vector<2x64xf32>
    %306 = arith.mulf %305, %304 : vector<2x64xf32>
    %307 = math.tanh %306 : vector<2x64xf32>
    %cst_100 = arith.constant 5.000000e-01 : f32
    %308 = vector.broadcast %cst_100 : f32 to vector<2x64xf32>
    %309 = arith.mulf %308, %307 : vector<2x64xf32>
    %cst_101 = arith.constant 5.000000e-01 : f32
    %310 = vector.broadcast %cst_101 : f32 to vector<2x64xf32>
    %311 = arith.addf %309, %310 : vector<2x64xf32>
    %312 = vector.extract_strided_slice %311 {offsets = [0, 0], sizes = [2, 32], strides = [1, 1]} : vector<2x64xf32> to vector<2x32xf32>
    %313 = vector.extract_strided_slice %311 {offsets = [0, 32], sizes = [2, 32], strides = [1, 1]} : vector<2x64xf32> to vector<2x32xf32>
    %314 = vector.extract_strided_slice %300 {offsets = [0, 64], sizes = [2, 32], strides = [1, 1]} : vector<2x96xf32> to vector<2x32xf32>
    %315 = vector.extract_strided_slice %301 {offsets = [0, 64], sizes = [2, 32], strides = [1, 1]} : vector<2x96xf32> to vector<2x32xf32>
    %316 = vector.broadcast %7 : vector<1x32xf32> to vector<2x32xf32>
    %317 = arith.addf %315, %316 : vector<2x32xf32>
    %318 = arith.mulf %312, %317 : vector<2x32xf32>
    %319 = arith.addf %314, %318 : vector<2x32xf32>
    %320 = math.tanh %319 : vector<2x32xf32>
    %cst_102 = arith.constant 1.000000e+00 : f32
    %321 = vector.broadcast %cst_102 : f32 to vector<2x32xf32>
    %322 = arith.subf %321, %313 : vector<2x32xf32>
    %323 = arith.mulf %322, %320 : vector<2x32xf32>
    %324 = arith.mulf %313, %261 : vector<2x32xf32>
    %325 = arith.addf %323, %324 : vector<2x32xf32>
    %cst_103 = arith.constant dense<0.000000e+00> : vector<2x128xf32>
    %326 = tpu.matmul %325, %8, %cst_103 {dimension_numbers = #tpu.dot_dimension_numbers<[1], [0], [0], [1], [0, 0, 1, 1], [], []>} : vector<2x32xf32>, vector<32x128xf32>, vector<2x128xf32> -> vector<2x128xf32>
    %327 = vector.broadcast %9 : vector<1x128xf32> to vector<2x128xf32>
    %328 = arith.addf %326, %327 : vector<2x128xf32>
    %c4_104 = arith.constant 4 : index
    %c0_105 = arith.constant 0 : index
    %c0_106 = arith.constant 0 : index
    %329 = vector.load %arg3[%c4_104, %c0_105, %c0_106] : memref<8x2x128xf32, #tpu.memory_space<vmem>>, vector<1x2x128xf32>
    %330 = vector.shape_cast %329 : vector<1x2x128xf32> to vector<2x128xf32>
    %331 = vector.shape_cast %328 : vector<2x128xf32> to vector<1x2x128xf32>
    tpu.vector_store %arg3[%c4_104, %c0_105, %c0_106], %331 {strides = array<i32>} : memref<8x2x128xf32, #tpu.memory_space<vmem>>, vector<1x2x128xf32>,
    %c5 = arith.constant 5 : index
    %c0_107 = arith.constant 0 : index
    %c0_108 = arith.constant 0 : index
    %332 = vector.load %arg0[%c5, %c0_107, %c0_108] : memref<8x2x8xf32, #tpu.memory_space<vmem>>, vector<1x2x8xf32>
    %333 = vector.shape_cast %332 : vector<1x2x8xf32> to vector<2x8xf32>
    %cst_109 = arith.constant dense<0.000000e+00> : vector<2x96xf32>
    %334 = tpu.matmul %333, %0, %cst_109 {dimension_numbers = #tpu.dot_dimension_numbers<[1], [0], [0], [1], [0, 0, 1, 1], [], []>} : vector<2x8xf32>, vector<8x96xf32>, vector<2x96xf32> -> vector<2x96xf32>
    %335 = vector.broadcast %2 : vector<1x96xf32> to vector<2x96xf32>
    %336 = arith.addf %334, %335 : vector<2x96xf32>
    %cst_110 = arith.constant dense<0.000000e+00> : vector<2x96xf32>
    %337 = tpu.matmul %297, %1, %cst_110 {dimension_numbers = #tpu.dot_dimension_numbers<[1], [0], [0], [1], [0, 0, 1, 1], [], []>} : vector<2x32xf32>, vector<32x96xf32>, vector<2x96xf32> -> vector<2x96xf32>
    %338 = vector.extract_strided_slice %336 {offsets = [0, 0], sizes = [2, 64], strides = [1, 1]} : vector<2x96xf32> to vector<2x64xf32>
    %339 = vector.extract_strided_slice %337 {offsets = [0, 0], sizes = [2, 64], strides = [1, 1]} : vector<2x96xf32> to vector<2x64xf32>
    %340 = arith.addf %338, %339 : vector<2x64xf32>
    %cst_111 = arith.constant 5.000000e-01 : f32
    %341 = vector.broadcast %cst_111 : f32 to vector<2x64xf32>
    %342 = arith.mulf %341, %340 : vector<2x64xf32>
    %343 = math.tanh %342 : vector<2x64xf32>
    %cst_112 = arith.constant 5.000000e-01 : f32
    %344 = vector.broadcast %cst_112 : f32 to vector<2x64xf32>
    %345 = arith.mulf %344, %343 : vector<2x64xf32>
    %cst_113 = arith.constant 5.000000e-01 : f32
    %346 = vector.broadcast %cst_113 : f32 to vector<2x64xf32>
    %347 = arith.addf %345, %346 : vector<2x64xf32>
    %348 = vector.extract_strided_slice %347 {offsets = [0, 0], sizes = [2, 32], strides = [1, 1]} : vector<2x64xf32> to vector<2x32xf32>
    %349 = vector.extract_strided_slice %347 {offsets = [0, 32], sizes = [2, 32], strides = [1, 1]} : vector<2x64xf32> to vector<2x32xf32>
    %350 = vector.extract_strided_slice %336 {offsets = [0, 64], sizes = [2, 32], strides = [1, 1]} : vector<2x96xf32> to vector<2x32xf32>
    %351 = vector.extract_strided_slice %337 {offsets = [0, 64], sizes = [2, 32], strides = [1, 1]} : vector<2x96xf32> to vector<2x32xf32>
    %352 = vector.broadcast %3 : vector<1x32xf32> to vector<2x32xf32>
    %353 = arith.addf %351, %352 : vector<2x32xf32>
    %354 = arith.mulf %348, %353 : vector<2x32xf32>
    %355 = arith.addf %350, %354 : vector<2x32xf32>
    %356 = math.tanh %355 : vector<2x32xf32>
    %cst_114 = arith.constant 1.000000e+00 : f32
    %357 = vector.broadcast %cst_114 : f32 to vector<2x32xf32>
    %358 = arith.subf %357, %349 : vector<2x32xf32>
    %359 = arith.mulf %358, %356 : vector<2x32xf32>
    %360 = arith.mulf %349, %297 : vector<2x32xf32>
    %361 = arith.addf %359, %360 : vector<2x32xf32>
    %cst_115 = arith.constant dense<0.000000e+00> : vector<2x96xf32>
    %362 = tpu.matmul %361, %4, %cst_115 {dimension_numbers = #tpu.dot_dimension_numbers<[1], [0], [0], [1], [0, 0, 1, 1], [], []>} : vector<2x32xf32>, vector<32x96xf32>, vector<2x96xf32> -> vector<2x96xf32>
    %363 = vector.broadcast %6 : vector<1x96xf32> to vector<2x96xf32>
    %364 = arith.addf %362, %363 : vector<2x96xf32>
    %cst_116 = arith.constant dense<0.000000e+00> : vector<2x96xf32>
    %365 = tpu.matmul %325, %5, %cst_116 {dimension_numbers = #tpu.dot_dimension_numbers<[1], [0], [0], [1], [0, 0, 1, 1], [], []>} : vector<2x32xf32>, vector<32x96xf32>, vector<2x96xf32> -> vector<2x96xf32>
    %366 = vector.extract_strided_slice %364 {offsets = [0, 0], sizes = [2, 64], strides = [1, 1]} : vector<2x96xf32> to vector<2x64xf32>
    %367 = vector.extract_strided_slice %365 {offsets = [0, 0], sizes = [2, 64], strides = [1, 1]} : vector<2x96xf32> to vector<2x64xf32>
    %368 = arith.addf %366, %367 : vector<2x64xf32>
    %cst_117 = arith.constant 5.000000e-01 : f32
    %369 = vector.broadcast %cst_117 : f32 to vector<2x64xf32>
    %370 = arith.mulf %369, %368 : vector<2x64xf32>
    %371 = math.tanh %370 : vector<2x64xf32>
    %cst_118 = arith.constant 5.000000e-01 : f32
    %372 = vector.broadcast %cst_118 : f32 to vector<2x64xf32>
    %373 = arith.mulf %372, %371 : vector<2x64xf32>
    %cst_119 = arith.constant 5.000000e-01 : f32
    %374 = vector.broadcast %cst_119 : f32 to vector<2x64xf32>
    %375 = arith.addf %373, %374 : vector<2x64xf32>
    %376 = vector.extract_strided_slice %375 {offsets = [0, 0], sizes = [2, 32], strides = [1, 1]} : vector<2x64xf32> to vector<2x32xf32>
    %377 = vector.extract_strided_slice %375 {offsets = [0, 32], sizes = [2, 32], strides = [1, 1]} : vector<2x64xf32> to vector<2x32xf32>
    %378 = vector.extract_strided_slice %364 {offsets = [0, 64], sizes = [2, 32], strides = [1, 1]} : vector<2x96xf32> to vector<2x32xf32>
    %379 = vector.extract_strided_slice %365 {offsets = [0, 64], sizes = [2, 32], strides = [1, 1]} : vector<2x96xf32> to vector<2x32xf32>
    %380 = vector.broadcast %7 : vector<1x32xf32> to vector<2x32xf32>
    %381 = arith.addf %379, %380 : vector<2x32xf32>
    %382 = arith.mulf %376, %381 : vector<2x32xf32>
    %383 = arith.addf %378, %382 : vector<2x32xf32>
    %384 = math.tanh %383 : vector<2x32xf32>
    %cst_120 = arith.constant 1.000000e+00 : f32
    %385 = vector.broadcast %cst_120 : f32 to vector<2x32xf32>
    %386 = arith.subf %385, %377 : vector<2x32xf32>
    %387 = arith.mulf %386, %384 : vector<2x32xf32>
    %388 = arith.mulf %377, %325 : vector<2x32xf32>
    %389 = arith.addf %387, %388 : vector<2x32xf32>
    %cst_121 = arith.constant dense<0.000000e+00> : vector<2x128xf32>
    %390 = tpu.matmul %389, %8, %cst_121 {dimension_numbers = #tpu.dot_dimension_numbers<[1], [0], [0], [1], [0, 0, 1, 1], [], []>} : vector<2x32xf32>, vector<32x128xf32>, vector<2x128xf32> -> vector<2x128xf32>
    %391 = vector.broadcast %9 : vector<1x128xf32> to vector<2x128xf32>
    %392 = arith.addf %390, %391 : vector<2x128xf32>
    %c5_122 = arith.constant 5 : index
    %c0_123 = arith.constant 0 : index
    %c0_124 = arith.constant 0 : index
    %393 = vector.load %arg3[%c5_122, %c0_123, %c0_124] : memref<8x2x128xf32, #tpu.memory_space<vmem>>, vector<1x2x128xf32>
    %394 = vector.shape_cast %393 : vector<1x2x128xf32> to vector<2x128xf32>
    %395 = vector.shape_cast %392 : vector<2x128xf32> to vector<1x2x128xf32>
    tpu.vector_store %arg3[%c5_122, %c0_123, %c0_124], %395 {strides = array<i32>} : memref<8x2x128xf32, #tpu.memory_space<vmem>>, vector<1x2x128xf32>,
    %c6 = arith.constant 6 : index
    %c0_125 = arith.constant 0 : index
    %c0_126 = arith.constant 0 : index
    %396 = vector.load %arg0[%c6, %c0_125, %c0_126] : memref<8x2x8xf32, #tpu.memory_space<vmem>>, vector<1x2x8xf32>
    %397 = vector.shape_cast %396 : vector<1x2x8xf32> to vector<2x8xf32>
    %cst_127 = arith.constant dense<0.000000e+00> : vector<2x96xf32>
    %398 = tpu.matmul %397, %0, %cst_127 {dimension_numbers = #tpu.dot_dimension_numbers<[1], [0], [0], [1], [0, 0, 1, 1], [], []>} : vector<2x8xf32>, vector<8x96xf32>, vector<2x96xf32> -> vector<2x96xf32>
    %399 = vector.broadcast %2 : vector<1x96xf32> to vector<2x96xf32>
    %400 = arith.addf %398, %399 : vector<2x96xf32>
    %cst_128 = arith.constant dense<0.000000e+00> : vector<2x96xf32>
    %401 = tpu.matmul %361, %1, %cst_128 {dimension_numbers = #tpu.dot_dimension_numbers<[1], [0], [0], [1], [0, 0, 1, 1], [], []>} : vector<2x32xf32>, vector<32x96xf32>, vector<2x96xf32> -> vector<2x96xf32>
    %402 = vector.extract_strided_slice %400 {offsets = [0, 0], sizes = [2, 64], strides = [1, 1]} : vector<2x96xf32> to vector<2x64xf32>
    %403 = vector.extract_strided_slice %401 {offsets = [0, 0], sizes = [2, 64], strides = [1, 1]} : vector<2x96xf32> to vector<2x64xf32>
    %404 = arith.addf %402, %403 : vector<2x64xf32>
    %cst_129 = arith.constant 5.000000e-01 : f32
    %405 = vector.broadcast %cst_129 : f32 to vector<2x64xf32>
    %406 = arith.mulf %405, %404 : vector<2x64xf32>
    %407 = math.tanh %406 : vector<2x64xf32>
    %cst_130 = arith.constant 5.000000e-01 : f32
    %408 = vector.broadcast %cst_130 : f32 to vector<2x64xf32>
    %409 = arith.mulf %408, %407 : vector<2x64xf32>
    %cst_131 = arith.constant 5.000000e-01 : f32
    %410 = vector.broadcast %cst_131 : f32 to vector<2x64xf32>
    %411 = arith.addf %409, %410 : vector<2x64xf32>
    %412 = vector.extract_strided_slice %411 {offsets = [0, 0], sizes = [2, 32], strides = [1, 1]} : vector<2x64xf32> to vector<2x32xf32>
    %413 = vector.extract_strided_slice %411 {offsets = [0, 32], sizes = [2, 32], strides = [1, 1]} : vector<2x64xf32> to vector<2x32xf32>
    %414 = vector.extract_strided_slice %400 {offsets = [0, 64], sizes = [2, 32], strides = [1, 1]} : vector<2x96xf32> to vector<2x32xf32>
    %415 = vector.extract_strided_slice %401 {offsets = [0, 64], sizes = [2, 32], strides = [1, 1]} : vector<2x96xf32> to vector<2x32xf32>
    %416 = vector.broadcast %3 : vector<1x32xf32> to vector<2x32xf32>
    %417 = arith.addf %415, %416 : vector<2x32xf32>
    %418 = arith.mulf %412, %417 : vector<2x32xf32>
    %419 = arith.addf %414, %418 : vector<2x32xf32>
    %420 = math.tanh %419 : vector<2x32xf32>
    %cst_132 = arith.constant 1.000000e+00 : f32
    %421 = vector.broadcast %cst_132 : f32 to vector<2x32xf32>
    %422 = arith.subf %421, %413 : vector<2x32xf32>
    %423 = arith.mulf %422, %420 : vector<2x32xf32>
    %424 = arith.mulf %413, %361 : vector<2x32xf32>
    %425 = arith.addf %423, %424 : vector<2x32xf32>
    %cst_133 = arith.constant dense<0.000000e+00> : vector<2x96xf32>
    %426 = tpu.matmul %425, %4, %cst_133 {dimension_numbers = #tpu.dot_dimension_numbers<[1], [0], [0], [1], [0, 0, 1, 1], [], []>} : vector<2x32xf32>, vector<32x96xf32>, vector<2x96xf32> -> vector<2x96xf32>
    %427 = vector.broadcast %6 : vector<1x96xf32> to vector<2x96xf32>
    %428 = arith.addf %426, %427 : vector<2x96xf32>
    %cst_134 = arith.constant dense<0.000000e+00> : vector<2x96xf32>
    %429 = tpu.matmul %389, %5, %cst_134 {dimension_numbers = #tpu.dot_dimension_numbers<[1], [0], [0], [1], [0, 0, 1, 1], [], []>} : vector<2x32xf32>, vector<32x96xf32>, vector<2x96xf32> -> vector<2x96xf32>
    %430 = vector.extract_strided_slice %428 {offsets = [0, 0], sizes = [2, 64], strides = [1, 1]} : vector<2x96xf32> to vector<2x64xf32>
    %431 = vector.extract_strided_slice %429 {offsets = [0, 0], sizes = [2, 64], strides = [1, 1]} : vector<2x96xf32> to vector<2x64xf32>
    %432 = arith.addf %430, %431 : vector<2x64xf32>
    %cst_135 = arith.constant 5.000000e-01 : f32
    %433 = vector.broadcast %cst_135 : f32 to vector<2x64xf32>
    %434 = arith.mulf %433, %432 : vector<2x64xf32>
    %435 = math.tanh %434 : vector<2x64xf32>
    %cst_136 = arith.constant 5.000000e-01 : f32
    %436 = vector.broadcast %cst_136 : f32 to vector<2x64xf32>
    %437 = arith.mulf %436, %435 : vector<2x64xf32>
    %cst_137 = arith.constant 5.000000e-01 : f32
    %438 = vector.broadcast %cst_137 : f32 to vector<2x64xf32>
    %439 = arith.addf %437, %438 : vector<2x64xf32>
    %440 = vector.extract_strided_slice %439 {offsets = [0, 0], sizes = [2, 32], strides = [1, 1]} : vector<2x64xf32> to vector<2x32xf32>
    %441 = vector.extract_strided_slice %439 {offsets = [0, 32], sizes = [2, 32], strides = [1, 1]} : vector<2x64xf32> to vector<2x32xf32>
    %442 = vector.extract_strided_slice %428 {offsets = [0, 64], sizes = [2, 32], strides = [1, 1]} : vector<2x96xf32> to vector<2x32xf32>
    %443 = vector.extract_strided_slice %429 {offsets = [0, 64], sizes = [2, 32], strides = [1, 1]} : vector<2x96xf32> to vector<2x32xf32>
    %444 = vector.broadcast %7 : vector<1x32xf32> to vector<2x32xf32>
    %445 = arith.addf %443, %444 : vector<2x32xf32>
    %446 = arith.mulf %440, %445 : vector<2x32xf32>
    %447 = arith.addf %442, %446 : vector<2x32xf32>
    %448 = math.tanh %447 : vector<2x32xf32>
    %cst_138 = arith.constant 1.000000e+00 : f32
    %449 = vector.broadcast %cst_138 : f32 to vector<2x32xf32>
    %450 = arith.subf %449, %441 : vector<2x32xf32>
    %451 = arith.mulf %450, %448 : vector<2x32xf32>
    %452 = arith.mulf %441, %389 : vector<2x32xf32>
    %453 = arith.addf %451, %452 : vector<2x32xf32>
    %cst_139 = arith.constant dense<0.000000e+00> : vector<2x128xf32>
    %454 = tpu.matmul %453, %8, %cst_139 {dimension_numbers = #tpu.dot_dimension_numbers<[1], [0], [0], [1], [0, 0, 1, 1], [], []>} : vector<2x32xf32>, vector<32x128xf32>, vector<2x128xf32> -> vector<2x128xf32>
    %455 = vector.broadcast %9 : vector<1x128xf32> to vector<2x128xf32>
    %456 = arith.addf %454, %455 : vector<2x128xf32>
    %c6_140 = arith.constant 6 : index
    %c0_141 = arith.constant 0 : index
    %c0_142 = arith.constant 0 : index
    %457 = vector.load %arg3[%c6_140, %c0_141, %c0_142] : memref<8x2x128xf32, #tpu.memory_space<vmem>>, vector<1x2x128xf32>
    %458 = vector.shape_cast %457 : vector<1x2x128xf32> to vector<2x128xf32>
    %459 = vector.shape_cast %456 : vector<2x128xf32> to vector<1x2x128xf32>
    tpu.vector_store %arg3[%c6_140, %c0_141, %c0_142], %459 {strides = array<i32>} : memref<8x2x128xf32, #tpu.memory_space<vmem>>, vector<1x2x128xf32>,
    %c7 = arith.constant 7 : index
    %c0_143 = arith.constant 0 : index
    %c0_144 = arith.constant 0 : index
    %460 = vector.load %arg0[%c7, %c0_143, %c0_144] : memref<8x2x8xf32, #tpu.memory_space<vmem>>, vector<1x2x8xf32>
    %461 = vector.shape_cast %460 : vector<1x2x8xf32> to vector<2x8xf32>
    %cst_145 = arith.constant dense<0.000000e+00> : vector<2x96xf32>
    %462 = tpu.matmul %461, %0, %cst_145 {dimension_numbers = #tpu.dot_dimension_numbers<[1], [0], [0], [1], [0, 0, 1, 1], [], []>} : vector<2x8xf32>, vector<8x96xf32>, vector<2x96xf32> -> vector<2x96xf32>
    %463 = vector.broadcast %2 : vector<1x96xf32> to vector<2x96xf32>
    %464 = arith.addf %462, %463 : vector<2x96xf32>
    %cst_146 = arith.constant dense<0.000000e+00> : vector<2x96xf32>
    %465 = tpu.matmul %425, %1, %cst_146 {dimension_numbers = #tpu.dot_dimension_numbers<[1], [0], [0], [1], [0, 0, 1, 1], [], []>} : vector<2x32xf32>, vector<32x96xf32>, vector<2x96xf32> -> vector<2x96xf32>
    %466 = vector.extract_strided_slice %464 {offsets = [0, 0], sizes = [2, 64], strides = [1, 1]} : vector<2x96xf32> to vector<2x64xf32>
    %467 = vector.extract_strided_slice %465 {offsets = [0, 0], sizes = [2, 64], strides = [1, 1]} : vector<2x96xf32> to vector<2x64xf32>
    %468 = arith.addf %466, %467 : vector<2x64xf32>
    %cst_147 = arith.constant 5.000000e-01 : f32
    %469 = vector.broadcast %cst_147 : f32 to vector<2x64xf32>
    %470 = arith.mulf %469, %468 : vector<2x64xf32>
    %471 = math.tanh %470 : vector<2x64xf32>
    %cst_148 = arith.constant 5.000000e-01 : f32
    %472 = vector.broadcast %cst_148 : f32 to vector<2x64xf32>
    %473 = arith.mulf %472, %471 : vector<2x64xf32>
    %cst_149 = arith.constant 5.000000e-01 : f32
    %474 = vector.broadcast %cst_149 : f32 to vector<2x64xf32>
    %475 = arith.addf %473, %474 : vector<2x64xf32>
    %476 = vector.extract_strided_slice %475 {offsets = [0, 0], sizes = [2, 32], strides = [1, 1]} : vector<2x64xf32> to vector<2x32xf32>
    %477 = vector.extract_strided_slice %475 {offsets = [0, 32], sizes = [2, 32], strides = [1, 1]} : vector<2x64xf32> to vector<2x32xf32>
    %478 = vector.extract_strided_slice %464 {offsets = [0, 64], sizes = [2, 32], strides = [1, 1]} : vector<2x96xf32> to vector<2x32xf32>
    %479 = vector.extract_strided_slice %465 {offsets = [0, 64], sizes = [2, 32], strides = [1, 1]} : vector<2x96xf32> to vector<2x32xf32>
    %480 = vector.broadcast %3 : vector<1x32xf32> to vector<2x32xf32>
    %481 = arith.addf %479, %480 : vector<2x32xf32>
    %482 = arith.mulf %476, %481 : vector<2x32xf32>
    %483 = arith.addf %478, %482 : vector<2x32xf32>
    %484 = math.tanh %483 : vector<2x32xf32>
    %cst_150 = arith.constant 1.000000e+00 : f32
    %485 = vector.broadcast %cst_150 : f32 to vector<2x32xf32>
    %486 = arith.subf %485, %477 : vector<2x32xf32>
    %487 = arith.mulf %486, %484 : vector<2x32xf32>
    %488 = arith.mulf %477, %425 : vector<2x32xf32>
    %489 = arith.addf %487, %488 : vector<2x32xf32>
    %cst_151 = arith.constant dense<0.000000e+00> : vector<2x96xf32>
    %490 = tpu.matmul %489, %4, %cst_151 {dimension_numbers = #tpu.dot_dimension_numbers<[1], [0], [0], [1], [0, 0, 1, 1], [], []>} : vector<2x32xf32>, vector<32x96xf32>, vector<2x96xf32> -> vector<2x96xf32>
    %491 = vector.broadcast %6 : vector<1x96xf32> to vector<2x96xf32>
    %492 = arith.addf %490, %491 : vector<2x96xf32>
    %cst_152 = arith.constant dense<0.000000e+00> : vector<2x96xf32>
    %493 = tpu.matmul %453, %5, %cst_152 {dimension_numbers = #tpu.dot_dimension_numbers<[1], [0], [0], [1], [0, 0, 1, 1], [], []>} : vector<2x32xf32>, vector<32x96xf32>, vector<2x96xf32> -> vector<2x96xf32>
    %494 = vector.extract_strided_slice %492 {offsets = [0, 0], sizes = [2, 64], strides = [1, 1]} : vector<2x96xf32> to vector<2x64xf32>
    %495 = vector.extract_strided_slice %493 {offsets = [0, 0], sizes = [2, 64], strides = [1, 1]} : vector<2x96xf32> to vector<2x64xf32>
    %496 = arith.addf %494, %495 : vector<2x64xf32>
    %cst_153 = arith.constant 5.000000e-01 : f32
    %497 = vector.broadcast %cst_153 : f32 to vector<2x64xf32>
    %498 = arith.mulf %497, %496 : vector<2x64xf32>
    %499 = math.tanh %498 : vector<2x64xf32>
    %cst_154 = arith.constant 5.000000e-01 : f32
    %500 = vector.broadcast %cst_154 : f32 to vector<2x64xf32>
    %501 = arith.mulf %500, %499 : vector<2x64xf32>
    %cst_155 = arith.constant 5.000000e-01 : f32
    %502 = vector.broadcast %cst_155 : f32 to vector<2x64xf32>
    %503 = arith.addf %501, %502 : vector<2x64xf32>
    %504 = vector.extract_strided_slice %503 {offsets = [0, 0], sizes = [2, 32], strides = [1, 1]} : vector<2x64xf32> to vector<2x32xf32>
    %505 = vector.extract_strided_slice %503 {offsets = [0, 32], sizes = [2, 32], strides = [1, 1]} : vector<2x64xf32> to vector<2x32xf32>
    %506 = vector.extract_strided_slice %492 {offsets = [0, 64], sizes = [2, 32], strides = [1, 1]} : vector<2x96xf32> to vector<2x32xf32>
    %507 = vector.extract_strided_slice %493 {offsets = [0, 64], sizes = [2, 32], strides = [1, 1]} : vector<2x96xf32> to vector<2x32xf32>
    %508 = vector.broadcast %7 : vector<1x32xf32> to vector<2x32xf32>
    %509 = arith.addf %507, %508 : vector<2x32xf32>
    %510 = arith.mulf %504, %509 : vector<2x32xf32>
    %511 = arith.addf %506, %510 : vector<2x32xf32>
    %512 = math.tanh %511 : vector<2x32xf32>
    %cst_156 = arith.constant 1.000000e+00 : f32
    %513 = vector.broadcast %cst_156 : f32 to vector<2x32xf32>
    %514 = arith.subf %513, %505 : vector<2x32xf32>
    %515 = arith.mulf %514, %512 : vector<2x32xf32>
    %516 = arith.mulf %505, %453 : vector<2x32xf32>
    %517 = arith.addf %515, %516 : vector<2x32xf32>
    %cst_157 = arith.constant dense<0.000000e+00> : vector<2x128xf32>
    %518 = tpu.matmul %517, %8, %cst_157 {dimension_numbers = #tpu.dot_dimension_numbers<[1], [0], [0], [1], [0, 0, 1, 1], [], []>} : vector<2x32xf32>, vector<32x128xf32>, vector<2x128xf32> -> vector<2x128xf32>
    %519 = vector.broadcast %9 : vector<1x128xf32> to vector<2x128xf32>
    %520 = arith.addf %518, %519 : vector<2x128xf32>
    %c7_158 = arith.constant 7 : index
    %c0_159 = arith.constant 0 : index
    %c0_160 = arith.constant 0 : index
    %521 = vector.load %arg3[%c7_158, %c0_159, %c0_160] : memref<8x2x128xf32, #tpu.memory_space<vmem>>, vector<1x2x128xf32>
    %522 = vector.shape_cast %521 : vector<1x2x128xf32> to vector<2x128xf32>
    %523 = vector.shape_cast %520 : vector<2x128xf32> to vector<1x2x128xf32>
    tpu.vector_store %arg3[%c7_158, %c0_159, %c0_160], %523 {strides = array<i32>} : memref<8x2x128xf32, #tpu.memory_space<vmem>>, vector<1x2x128xf32>,
    return
  }
}

</mosaic_0001>

<bundles_post_ra>
// kernel: neural_net_forward.1
= control target key start
LH: loop header
LB: loop body
LE: loop exit
PB: predicated region body
PF: predicated region fallthrough
CT: control target
= control target key end

     0   :  { %8 = vsyncpa [#allocation3], 0  ;;  %s4339_s12 = smov [#allocation2]   ;;  %s4910_s0 = inlined_call_operand.vmem [shape: f32[8,2,8], index: 0, kind: input, shape index: {}]   ;;  %s4911_s1 = inlined_call_operand.hbm [shape: f32[136,128], index: 1, kind: input, shape index: {}]   ;;  %s4912_s2 = inlined_call_operand.vmem [shape: f32[5,128], index: 2, kind: input, shape index: {}]   ;;  %s4913_s3 = inlined_call_operand.vmem [shape: f32[8,2,128], index: 3, kind: output, shape index: {}]  }
   0x1   :  { %s16_s13 = sshll.u32 %s4339_s12, 4  ;;  %s4315_s16 = scalar_lea.hbm %s4911_s1, 2176  ;;  %s17_s13 = int_to_ptr.vmem [resolvable:$true] %s16_s13 }
   0x2   :  { %p4316_p0 = scmp.ne.s32.totalorder %s4911_s1, %s4315_s16  ;;  %p4319_p1 = scmp.lt.u32.totalorder %s4315_s16, %s4911_s1 }
   0x4   :  { %p4321_p2 = pnand %p4319_p1, %p4316_p0 }
   0x6   :  { %4324 = shalt.err (!%p4321_p2)
}
   0x7   :  { %s4325_s21 = scalar_lea.vmem %s17_s13, 2176  ;;  %p4330_p4 = scmp.lt.s32.totalorder %s17_s13, %s17_s13 }
   0x8   :  { %p4326_p3 = scmp.ne.s32.totalorder %s17_s13, %s4325_s21  ;;  %p4331_p5 = scmp.lt.s32.totalorder %s4325_s21, %s4325_s21 }
   0xa   :  { %p4332_p6 = por %p4331_p5, %p4330_p4 }
   0xc   :  { %p4333_p7 = pnand %p4332_p6, %p4326_p3 }
   0xe   :  { %4336 = shalt.err (!%p4333_p7)
}
   0xf   :  { %s4340_s22 = smov 128   ;;  %s4341_s23 = smov 8  }
  0x10   :  { %22 = dma.hbm_to_vmem [thread:$0]  %s4911_s1, 2176, %s17_s13, [#allocation3], %s4340_s22, %s4340_s22, %s4341_s23  }
  0x11   :  { %4337 = dma.done.wait [#allocation3], 2176  }
  0x12   :  { %4338 = vsyncadd [#allocation3], 4294965120  ;;  %v4342_v0 = vmov 0.0|0.0   ;;  %v4343_v1 = vmov 0.0   ;;  %vm4344_vm0 = vmmov 0   ;;  %vm55_vm1 = vcmask 64512  }
  0x13   :  { %4047 = vmatprep.subr.bf16.mxu1 %v4342_v0  ;;  %3655 = vmatprep.subr.mxu0 %v4343_v1  ;;  %v29_v2 = vld [vmem:[#allocation2 + $0x8] sm:$0xff]  ;;  %v30_v3 = vld [vmem:[#allocation2 + $0x10] sm:$0xff]  ;;  %v4385_v4 = vld [vmem:[#allocation2] sm:$0xff]  ;;  %s4345_s29 = smov 64   ;;  %s4346_s5 = smov 96   ;;  %vm129_vm2 = vcmask 261120  }
  0x14   :  { %3657 = vmatprep.mubr.msk.f32.mxu0 %vm4344_vm0, %v4343_v1  ;;  %3668 = vmatprep.mubr.msk.f32.mxu1 %vm4344_vm0, %v4343_v1  ;;  %v4387_v5 = vpack.c.bf16 %v30_v3, %v29_v2  ;;  %v31_v6 = vld [vmem:[#allocation2 + $0x18] sm:$0xff]  ;;  %v32_v7 = vld [vmem:[#allocation2 + $0x20] sm:$0xff]  ;;  %v39_v28 = vld [vmem:[#allocation2 + $0x48] sm:$0xff] }
  0x15   :  { %3656 = vmatpush3.msra.mxu0 %v4385_v4  ;;  %v50_v8 = vld [vmem:[%s4910_s0] sm:$0x3]  ;;  %v4399_v10 = vpack.c.bf16 %v32_v7, %v31_v6  ;;  %v40_v29 = vld [vmem:[#allocation2 + $0x50] sm:$0xff]  ;;  %v41_v30 = vld [vmem:[#allocation2 + $0x58] sm:$0xff] }
  0x16   :  { %3658 = vmatmul.mubr.msk.f32.vlgmr.msra.gmra.mrb[0].mxu0 %vm55_vm1, %v50_v8  ;;  %v3424_v9 = vld [vmem:[%s4912_s2 + $0x1] ss:$0 sm:$0xff]  ;;  %4053 = vmatprep.subr.bf16.mxu0 %v4342_v0  ;;  %v4417_v17 = vld [vmem:[%s4912_s2] ss:$0 sm:$0xff]  ;;  %v4421_v31 = vpack.c.bf16 %v40_v29, %v39_v28  ;;  %v35_v33 = vld [vmem:[#allocation2 + $0x28] sm:$0xff] }
  0x17   :  { %4049 = vmatpush3.bf16.msra.mxu1 %v4387_v5  ;;  %213 = vrot.lane.b32.xlu0 %v3424_v9, %s4345_s29  ;;  %v42_v32 = vld [vmem:[#allocation2 + $0x60] sm:$0xff]  ;;  %v36_v34 = vld [vmem:[#allocation2 + $0x30] sm:$0xff]  ;;  %v37_v36 = vld [vmem:[#allocation2 + $0x38] sm:$0xff] }
  0x18   :  { %4050 = vmatprep.subr.bf16.mxu1 %v4342_v0  ;;  %3679 = vmatprep.mubr.msk.f32.mxu0 %vm4344_vm0, %v4343_v1  ;;  %v4423_v35 = vpack.c.bf16 %v36_v34, %v35_v33  ;;  %v38_v37 = vld [vmem:[#allocation2 + $0x40] sm:$0xff]  ;;  %v4426_v38 = vpack.c.bf16 %v42_v32, %v41_v30  ;;  %v45_v3 = vld [vmem:[#allocation2 + $0x68] sm:$0xff]  ;;  %v46_v6 = vld [vmem:[#allocation2 + $0x70] sm:$0xff] }
  0x19   :  { %v4430_v39 = vpack.c.bf16 %v38_v37, %v37_v36  ;;  %v3427_v41 = vld [vmem:[%s4912_s2 + $0x3] ss:$0 sm:$0xff]  ;;  %v4461_v52 = vld [vmem:[%s4912_s2 + $0x2] ss:$0 sm:$0xff]  ;;  %v47_v7 = vld [vmem:[#allocation2 + $0x78] sm:$0xff]  ;;  %v4465_v8 = vpack.c.bf16 %v46_v6, %v45_v3 }
  0x1a   :  { %4055 = vmatpush3.bf16.msra.mxu0 %v4423_v35  ;;  %v48_v9 = vld [vmem:[#allocation2 + $0x80] sm:$0xff] }
  0x1b   :  { %4052 = vmatpush3.bf16.msra.mxu1 %v4399_v10  ;;  %4056 = vmatprep.subr.bf16.mxu0 %v4342_v0 }
  0x1c   :  { %4059 = vmatprep.subr.bf16.mxu1 %v4342_v0 }
  0x1e   :  { %3669 = vmatmul.mubr.f32.vlgmr.msra.gmra.mrb[0].mxu1 %v4343_v1  ;;  %4058 = vmatpush3.bf16.msra.mxu0 %v4430_v39 }
  0x1f   :  { %3690 = vmatprep.mubr.msk.f32.mxu1 %vm4344_vm0, %v4343_v1  ;;  %4061 = vmatpush3.bf16.msra.mxu1 %v4421_v31 }
  0x20   :  { %4062 = vmatprep.subr.bf16.mxu1 %v4342_v0  ;;  %4065 = vmatprep.subr.bf16.mxu0 %v4342_v0 }
  0x23   :  { %4064 = vmatpush3.bf16.msra.mxu1 %v4426_v38 }
  0x24   :  { %3704 = vmatprep.subr.mxu1 %v4343_v1 }
  0x26   :  { %3691 = vmatmul.mubr.f32.vlgmr.msra.gmra.mrb[2].mxu1 %v4343_v1 }
  0x27   :  { %3705 = vmatpush3.msra.mxu1 %v4385_v4  ;;  %3706 = vmatprep.mubr.msk.f32.mxu1 %vm4344_vm0, %v4343_v1 }
  0x28   :  { %4077 = vmatprep.subr.bf16.mxu1 %v4342_v0 }
  0x89   :  { %v4410_v13 = vpop.permute.xlu0 %213 }
  0xe9   :  { %v125_v11 = vpop.f32.mrb[0].mxu0 }
  0xea   :  { %v3659_v12 = vpop.f32.mrb[1].mxu0  ;;  %v126_v18 = vadd.f32 %v4417_v17, %v125_v11  ;;  %v4468_v11 = vpack.c.bf16 %v48_v9, %v47_v7 }
  0xf1   :  { %v199_v14 = vpop.f32.mrb[0].mxu1 }
  0xf2   :  { %v216_v15 = vadd.f32 %v4410_v13, %v199_v14  ;;  %v3670_v16 = vpop.f32.mrb[1].mxu1  ;;  %v203_v19 = vadd.f32 %v199_v14, %v126_v18  ;;  %v3430_v14 = vld [vmem:[%s4910_s0 + $0x2] sm:$0x3] }
  0xf3   :  { %3707 = vmatmul.mubr.msk.f32.vlgmr.msra.gmra.mrb[4].mxu1 %vm55_vm1, %v3430_v14  ;;  %v3437_v14 = vld [vmem:[%s4910_s0 + $0x4] sm:$0x3] }
  0xf4   :  { %218 = vrot.lane.b32.xlu0 %v216_v15, %s4345_s29  ;;  %v204_v20 = vmul.f32 0.5, %v203_v19  ;;  %4079 = vmatpush3.bf16.msra.mxu1 %v4423_v35 }
  0xf5   :  { %3728 = vmatprep.mubr.msk.f32.mxu1 %vm4344_vm0, %v4343_v1  ;;  %4080 = vmatprep.subr.bf16.mxu1 %v4342_v0 }
  0xf6   :  { %4247 = vtanh.f32 %v204_v20 }
  0xf8   :  { %4082 = vmatpush3.bf16.msra.mxu1 %v4430_v39 }
  0xf9   :  { %v381_v47 = vpop.f32.mrb[2].mxu1  ;;  %4089 = vmatprep.subr.bf16.mxu1 %v4342_v0 }
  0xfa   :  { %v3692_v48 = vpop.f32.mrb[3].mxu1 }
 0x100   :  { %v4248_v21 = vpop.eup %4247 }
 0x101   :  { %v206_v22 = vmul.f32 0.5, %v4248_v21 }
 0x103   :  { %v207_v23 = vadd.f32 0.5, %v206_v22 }
 0x105   :  { %v228_v42 = vsub.f32 1.0, %v207_v23  ;;  %v234_v44 = vmul.f32 0.0, %v207_v23 }
 0x166   :  { %v219_v24 = vpop.permute.xlu0 %218 }
 0x167   :  { %v221_v25 = vmul.f32 %v219_v24, %v207_v23  ;;  %v4510_v24 = vld [vmem:[%s4912_s2 + $0x4] ss:$0 sm:$0xff] }
 0x169   :  { %223 = vrot.lane.b32.xlu1 %v221_v25, %s4345_s29 }
 0x1c6   :  { %v569_v22 = vpop.f32.mrb[4].mxu1 }
 0x1c7   :  { %v3708_v23 = vpop.f32.mrb[5].mxu1  ;;  %v570_v34 = vadd.f32 %v4417_v17, %v569_v22 }
 0x1db   :  { %v224_v26 = vpop.permute.xlu1 %223 }
 0x1dc   :  { %v226_v27 = vadd.f32 %v224_v26, %v126_v18 }
 0x1de   :  { %4249 = vtanh.f32 %v226_v27 }
 0x1e8   :  { %v4250_v40 = vpop.eup %4249 }
 0x1e9   :  { %230 = vrot.lane.b32.xlu1 %v4250_v40, %s4346_s5 }
 0x1ed   :  { %395 = vrot.lane.b32.xlu1 %v3427_v41, %s4345_s29 }
 0x25b   :  { %v231_v43 = vpop.permute.xlu1 %230 }
 0x25c   :  { %v233_v45 = vmul.f32 %v231_v43, %v228_v42 }
 0x25e   :  { %v4447_v46 = vadd.f32 %v234_v44, %v233_v45 }
 0x25f   :  { %v4451_v49 = vpop.permute.xlu1 %395 }
 0x260   :  { %241 = vrot.lane.b32.xlu0 %v4447_v46, %s4346_s5  ;;  %v398_v50 = vadd.f32 %v4451_v49, %v381_v47 }
 0x264   :  { %400 = vrot.lane.b32.xlu0 %v398_v50, %s4345_s29 }
 0x2d2   :  { %v242_v51 = vpop.permute.xlu0 %241 }
 0x2d3   :  { %3680 = vmatmul.mubr.msk.f32.vlgmr.msra.gmra.mrb[2].mxu0 %vm129_vm2, %v242_v51 }
 0x2d4   :  { %3701 = vmatprep.mubr.msk.f32.mxu0 %vm4344_vm0, %v4343_v1  ;;  %4067 = vmatpush3.bf16.msra.mxu0 %v4465_v8 }
 0x2d5   :  { %4068 = vmatprep.subr.bf16.mxu0 %v4342_v0 }
 0x2d6   :  { %v401_v60 = vpop.permute.xlu0 %400 }
 0x2d8   :  { %4070 = vmatpush3.bf16.msra.mxu0 %v4468_v11 }
 0x2d9   :  { %4071 = vmatprep.subr.bf16.mxu0 %v4342_v0 }
 0x3a6   :  { %v311_v53 = vpop.f32.mrb[2].mxu0 }
 0x3a7   :  { %v312_v54 = vadd.f32 %v4461_v52, %v311_v53  ;;  %v3681_v55 = vpop.f32.mrb[3].mxu0 }
 0x3a9   :  { %v385_v56 = vadd.f32 %v381_v47, %v312_v54 }
 0x3ab   :  { %v386_v57 = vmul.f32 0.5, %v385_v56 }
 0x3ad   :  { %4251 = vtanh.f32 %v386_v57 }
 0x3b7   :  { %v4252_v58 = vpop.eup %4251 }
 0x3b8   :  { %v388_v59 = vmul.f32 0.5, %v4252_v58 }
 0x3ba   :  { %v389_v61 = vadd.f32 0.5, %v388_v59 }
 0x3bc   :  { %v403_v62 = vmul.f32 %v401_v60, %v389_v61  ;;  %v410_v15 = vsub.f32 1.0, %v389_v61  ;;  %v416_v18 = vmul.f32 0.0, %v389_v61 }
 0x3be   :  { %405 = vrot.lane.b32.xlu1 %v403_v62, %s4345_s29 }
 0x430   :  { %v406_v63 = vpop.permute.xlu1 %405 }
 0x431   :  { %v408_v2 = vadd.f32 %v406_v63, %v312_v54 }
 0x433   :  { %4253 = vtanh.f32 %v408_v2 }
 0x43d   :  { %v4254_v12 = vpop.eup %4253 }
 0x43e   :  { %412 = vrot.lane.b32.xlu0 %v4254_v12, %s4346_s5 }
 0x4b0   :  { %v413_v16 = vpop.permute.xlu0 %412 }
 0x4b1   :  { %v415_v19 = vmul.f32 %v413_v16, %v410_v15 }
 0x4b3   :  { %v4482_v20 = vadd.f32 %v416_v18, %v415_v19 }
 0x4b5   :  { %423 = vrot.lane.b32.xlu1 %v4482_v20, %s4346_s5 }
 0x527   :  { %v424_v21 = vpop.permute.xlu1 %423 }
 0x528   :  { %3702 = vmatmul.mubr.msk.f32.vlgmr.msra.gmra.mrb[4].mxu0 %vm129_vm2, %v424_v21 }
 0x529   :  { %4073 = vmatpush3.bf16.msra.mxu0 %v4387_v5  ;;  %3717 = vmatprep.mubr.msk.f32.mxu0 %vm4344_vm0, %v4343_v1 }
 0x52a   :  { %4074 = vmatprep.subr.bf16.mxu0 %v4342_v0 }
 0x52d   :  { %4076 = vmatpush3.bf16.msra.mxu0 %v4399_v10 }
 0x52e   :  { %4083 = vmatprep.subr.bf16.mxu0 %v4342_v0 }
 0x530   :  { %3718 = vmatmul.mubr.msk.f32.vlgmr.msra.gmra.mrb[6].mxu0 %vm129_vm2, %v242_v51 }
 0x531   :  { %4085 = vmatpush3.bf16.msra.mxu0 %v4421_v31  ;;  %3739 = vmatprep.mubr.msk.f32.mxu0 %vm4344_vm0, %v4343_v1 }
 0x532   :  { %4086 = vmatprep.subr.bf16.mxu0 %v4342_v0 }
 0x535   :  { %4088 = vmatpush3.bf16.msra.mxu0 %v4426_v38 }
 0x536   :  { %3753 = vmatprep.subr.mxu0 %v4343_v1 }
 0x538   :  { %3740 = vmatmul.mubr.msk.f32.vlgmr.msra.gmra.mrb[8].mxu0 %vm129_vm2, %v424_v21 }
 0x539   :  { %3754 = vmatpush3.msra.mxu0 %v4385_v4  ;;  %3755 = vmatprep.mubr.msk.f32.mxu0 %vm4344_vm0, %v4343_v1 }
 0x53a   :  { %4101 = vmatprep.subr.bf16.mxu0 %v4342_v0 }
 0x53c   :  { %3756 = vmatmul.mubr.msk.f32.vlgmr.msra.gmra.mrb[10].mxu0 %vm55_vm1, %v3437_v14  ;;  %v3444_v14 = vld [vmem:[%s4910_s0 + $0x6] sm:$0x3] }
 0x53d   :  { %4103 = vmatpush3.bf16.msra.mxu0 %v4423_v35  ;;  %3777 = vmatprep.mubr.msk.f32.mxu0 %vm4344_vm0, %v4343_v1 }
 0x53e   :  { %4104 = vmatprep.subr.bf16.mxu0 %v4342_v0 }
 0x541   :  { %4106 = vmatpush3.bf16.msra.mxu0 %v4430_v39 }
 0x542   :  { %4113 = vmatprep.subr.bf16.mxu0 %v4342_v0 }
 0x5fb   :  { %v493_v25 = vpop.f32.mrb[4].mxu0 }
 0x5fc   :  { %v494_v26 = vadd.f32 %v4510_v24, %v493_v25  ;;  %v3703_v27 = vpop.f32.mrb[5].mxu0 }
 0x5fe   :  { %497 = vst [vmem:[%s4913_s3] sm:$0x3] %v494_v26 }
 0x603   :  { %v639_v28 = vpop.f32.mrb[6].mxu0 }
 0x604   :  { %v648_v29 = vadd.f32 %v639_v28, %v4410_v13  ;;  %v3719_v30 = vpop.f32.mrb[7].mxu0  ;;  %v643_v36 = vadd.f32 %v639_v28, %v570_v34 }
 0x606   :  { %650 = vrot.lane.b32.xlu0 %v648_v29, %s4345_s29  ;;  %v644_v37 = vmul.f32 0.5, %v643_v36 }
 0x608   :  { %4255 = vtanh.f32 %v644_v37 }
 0x60b   :  { %v809_v32 = vpop.f32.mrb[8].mxu0 }
 0x60c   :  { %v3741_v33 = vpop.f32.mrb[9].mxu0  ;;  %v818_v50 = vadd.f32 %v809_v32, %v4451_v49 }
 0x612   :  { %v4256_v40 = vpop.eup %4255 }
 0x613   :  { %v646_v41 = vmul.f32 0.5, %v4256_v40 }
 0x615   :  { %v647_v42 = vadd.f32 0.5, %v646_v41 }
 0x617   :  { %v660_v51 = vsub.f32 1.0, %v647_v42  ;;  %v666_v54 = vmul.f32 %v647_v42, %v4447_v46 }
 0x678   :  { %v651_v43 = vpop.permute.xlu0 %650 }
 0x679   :  { %v653_v44 = vmul.f32 %v651_v43, %v647_v42 }
 0x67b   :  { %655 = vrot.lane.b32.xlu1 %v653_v44, %s4345_s29 }
 0x6ed   :  { %v656_v45 = vpop.permute.xlu1 %655 }
 0x6ee   :  { %v658_v47 = vadd.f32 %v656_v45, %v570_v34 }
 0x6f0   :  { %4257 = vtanh.f32 %v658_v47 }
 0x6fa   :  { %v4258_v48 = vpop.eup %4257 }
 0x6fb   :  { %662 = vrot.lane.b32.xlu0 %v4258_v48, %s4346_s5 }
 0x6ff   :  { %820 = vrot.lane.b32.xlu0 %v818_v50, %s4345_s29 }
 0x76d   :  { %v663_v53 = vpop.permute.xlu0 %662 }
 0x76e   :  { %v665_v55 = vmul.f32 %v663_v53, %v660_v51 }
 0x770   :  { %v4524_v56 = vadd.f32 %v666_v54, %v665_v55 }
 0x771   :  { %v821_v3 = vpop.permute.xlu0 %820 }
 0x772   :  { %669 = vrot.lane.b32.xlu1 %v4524_v56, %s4346_s5 }
 0x7e4   :  { %v670_v57 = vpop.permute.xlu1 %669 }
 0x7e5   :  { %3729 = vmatmul.mubr.msk.f32.vlgmr.msra.gmra.mrb[6].mxu1 %vm129_vm2, %v670_v57 }
 0x7e6   :  { %4091 = vmatpush3.bf16.msra.mxu1 %v4465_v8  ;;  %3750 = vmatprep.mubr.msk.f32.mxu1 %vm4344_vm0, %v4343_v1 }
 0x7e7   :  { %4092 = vmatprep.subr.bf16.mxu1 %v4342_v0 }
 0x7ea   :  { %4094 = vmatpush3.bf16.msra.mxu1 %v4468_v11 }
 0x7eb   :  { %4095 = vmatprep.subr.bf16.mxu1 %v4342_v0 }
 0x8b8   :  { %v739_v46 = vpop.f32.mrb[6].mxu1 }
 0x8b9   :  { %v740_v58 = vadd.f32 %v4461_v52, %v739_v46  ;;  %v3730_v59 = vpop.f32.mrb[7].mxu1 }
 0x8bb   :  { %v813_v60 = vadd.f32 %v809_v32, %v740_v58 }
 0x8bd   :  { %v814_v61 = vmul.f32 0.5, %v813_v60 }
 0x8bf   :  { %4259 = vtanh.f32 %v814_v61 }
 0x8c9   :  { %v4260_v62 = vpop.eup %4259 }
 0x8ca   :  { %v816_v63 = vmul.f32 0.5, %v4260_v62 }
 0x8cc   :  { %v817_v2 = vadd.f32 0.5, %v816_v63 }
 0x8ce   :  { %v823_v6 = vmul.f32 %v821_v3, %v817_v2  ;;  %v830_v15 = vsub.f32 1.0, %v817_v2  ;;  %v836_v18 = vmul.f32 %v817_v2, %v4482_v20  ;;  %v986_v20 = vpop.f32.mrb[10].mxu0 }
 0x8cf   :  { %v3757_v23 = vpop.f32.mrb[11].mxu0  ;;  %v987_v34 = vadd.f32 %v4417_v17, %v986_v20 }
 0x8d0   :  { %825 = vrot.lane.b32.xlu1 %v823_v6, %s4345_s29 }
 0x942   :  { %v826_v7 = vpop.permute.xlu1 %825 }
 0x943   :  { %v828_v9 = vadd.f32 %v826_v7, %v740_v58 }
 0x945   :  { %4261 = vtanh.f32 %v828_v9 }
 0x94f   :  { %v4262_v12 = vpop.eup %4261 }
 0x950   :  { %832 = vrot.lane.b32.xlu0 %v4262_v12, %s4346_s5 }
 0x9c2   :  { %v833_v16 = vpop.permute.xlu0 %832 }
 0x9c3   :  { %v835_v19 = vmul.f32 %v833_v16, %v830_v15 }
 0x9c5   :  { %v4547_v21 = vadd.f32 %v836_v18, %v835_v19 }
 0x9c7   :  { %839 = vrot.lane.b32.xlu1 %v4547_v21, %s4346_s5 }
 0xa39   :  { %v840_v22 = vpop.permute.xlu1 %839 }
 0xa3a   :  { %3751 = vmatmul.mubr.msk.f32.vlgmr.msra.gmra.mrb[8].mxu1 %vm129_vm2, %v840_v22 }
 0xa3b   :  { %4097 = vmatpush3.bf16.msra.mxu1 %v4387_v5  ;;  %3766 = vmatprep.mubr.msk.f32.mxu1 %vm4344_vm0, %v4343_v1 }
 0xa3c   :  { %4098 = vmatprep.subr.bf16.mxu1 %v4342_v0 }
 0xa3f   :  { %4100 = vmatpush3.bf16.msra.mxu1 %v4399_v10 }
 0xa40   :  { %4107 = vmatprep.subr.bf16.mxu1 %v4342_v0 }
 0xa42   :  { %3767 = vmatmul.mubr.msk.f32.vlgmr.msra.gmra.mrb[10].mxu1 %vm129_vm2, %v670_v57 }
 0xa43   :  { %4109 = vmatpush3.bf16.msra.mxu1 %v4421_v31  ;;  %3788 = vmatprep.mubr.msk.f32.mxu1 %vm4344_vm0, %v4343_v1 }
 0xa44   :  { %4110 = vmatprep.subr.bf16.mxu1 %v4342_v0 }
 0xa47   :  { %4112 = vmatpush3.bf16.msra.mxu1 %v4426_v38 }
 0xa48   :  { %3802 = vmatprep.subr.mxu1 %v4343_v1 }
 0xa4a   :  { %3789 = vmatmul.mubr.msk.f32.vlgmr.msra.gmra.mrb[12].mxu1 %vm129_vm2, %v840_v22 }
 0xa4b   :  { %3803 = vmatpush3.msra.mxu1 %v4385_v4  ;;  %3804 = vmatprep.mubr.msk.f32.mxu1 %vm4344_vm0, %v4343_v1 }
 0xa4c   :  { %4125 = vmatprep.subr.bf16.mxu1 %v4342_v0 }
 0xa4e   :  { %3805 = vmatmul.mubr.msk.f32.vlgmr.msra.gmra.mrb[14].mxu1 %vm55_vm1, %v3444_v14  ;;  %v3451_v14 = vld [vmem:[%s4910_s0 + $0x8] sm:$0x3] }
 0xa4f   :  { %4127 = vmatpush3.bf16.msra.mxu1 %v4423_v35  ;;  %3826 = vmatprep.mubr.msk.f32.mxu1 %vm4344_vm0, %v4343_v1 }
 0xa50   :  { %4128 = vmatprep.subr.bf16.mxu1 %v4342_v0 }
 0xa53   :  { %4130 = vmatpush3.bf16.msra.mxu1 %v4430_v39 }
 0xa54   :  { %4137 = vmatprep.subr.bf16.mxu1 %v4342_v0 }
 0xb0d   :  { %v909_v25 = vpop.f32.mrb[8].mxu1 }
 0xb0e   :  { %v910_v26 = vadd.f32 %v4510_v24, %v909_v25  ;;  %v3752_v27 = vpop.f32.mrb[9].mxu1 }
 0xb10   :  { %3436 = vst [vmem:[%s4913_s3 + $0x2] sm:$0x3] %v910_v26 }
 0xb15   :  { %v1056_v28 = vpop.f32.mrb[10].mxu1 }
 0xb16   :  { %v1065_v29 = vadd.f32 %v1056_v28, %v4410_v13  ;;  %v3768_v30 = vpop.f32.mrb[11].mxu1  ;;  %v1060_v36 = vadd.f32 %v1056_v28, %v987_v34 }
 0xb18   :  { %1067 = vrot.lane.b32.xlu0 %v1065_v29, %s4345_s29  ;;  %v1061_v37 = vmul.f32 0.5, %v1060_v36 }
 0xb1a   :  { %4263 = vtanh.f32 %v1061_v37 }
 0xb1d   :  { %v1226_v32 = vpop.f32.mrb[12].mxu1 }
 0xb1e   :  { %v3790_v33 = vpop.f32.mrb[13].mxu1  ;;  %v1235_v50 = vadd.f32 %v1226_v32, %v4451_v49 }
 0xb24   :  { %v4264_v40 = vpop.eup %4263 }
 0xb25   :  { %v1063_v41 = vmul.f32 0.5, %v4264_v40 }
 0xb27   :  { %v1064_v42 = vadd.f32 0.5, %v1063_v41 }
 0xb29   :  { %v1077_v51 = vsub.f32 1.0, %v1064_v42  ;;  %v1083_v54 = vmul.f32 %v1064_v42, %v4524_v56 }
 0xb8a   :  { %v1068_v43 = vpop.permute.xlu0 %1067 }
 0xb8b   :  { %v1070_v44 = vmul.f32 %v1068_v43, %v1064_v42 }
 0xb8d   :  { %1072 = vrot.lane.b32.xlu1 %v1070_v44, %s4345_s29 }
 0xbff   :  { %v1073_v45 = vpop.permute.xlu1 %1072 }
 0xc00   :  { %v1075_v47 = vadd.f32 %v1073_v45, %v987_v34 }
 0xc02   :  { %4265 = vtanh.f32 %v1075_v47 }
 0xc0c   :  { %v4266_v48 = vpop.eup %4265 }
 0xc0d   :  { %1079 = vrot.lane.b32.xlu0 %v4266_v48, %s4346_s5 }
 0xc11   :  { %1237 = vrot.lane.b32.xlu0 %v1235_v50, %s4345_s29 }
 0xc7f   :  { %v1080_v53 = vpop.permute.xlu0 %1079 }
 0xc80   :  { %v1082_v55 = vmul.f32 %v1080_v53, %v1077_v51 }
 0xc82   :  { %v4584_v57 = vadd.f32 %v1083_v54, %v1082_v55 }
 0xc83   :  { %v1238_v3 = vpop.permute.xlu0 %1237 }
 0xc84   :  { %1086 = vrot.lane.b32.xlu1 %v4584_v57, %s4346_s5 }
 0xcf6   :  { %v1087_v46 = vpop.permute.xlu1 %1086 }
 0xcf7   :  { %3778 = vmatmul.mubr.msk.f32.vlgmr.msra.gmra.mrb[12].mxu0 %vm129_vm2, %v1087_v46 }
 0xcf8   :  { %4115 = vmatpush3.bf16.msra.mxu0 %v4465_v8  ;;  %3799 = vmatprep.mubr.msk.f32.mxu0 %vm4344_vm0, %v4343_v1 }
 0xcf9   :  { %4116 = vmatprep.subr.bf16.mxu0 %v4342_v0 }
 0xcfc   :  { %4118 = vmatpush3.bf16.msra.mxu0 %v4468_v11 }
 0xcfd   :  { %4119 = vmatprep.subr.bf16.mxu0 %v4342_v0 }
 0xdca   :  { %v1156_v56 = vpop.f32.mrb[12].mxu0 }
 0xdcb   :  { %v1157_v58 = vadd.f32 %v4461_v52, %v1156_v56  ;;  %v3779_v59 = vpop.f32.mrb[13].mxu0 }
 0xdcd   :  { %v1230_v60 = vadd.f32 %v1226_v32, %v1157_v58 }
 0xdcf   :  { %v1231_v61 = vmul.f32 0.5, %v1230_v60 }
 0xdd1   :  { %4267 = vtanh.f32 %v1231_v61 }
 0xddb   :  { %v4268_v62 = vpop.eup %4267 }
 0xddc   :  { %v1233_v63 = vmul.f32 0.5, %v4268_v62 }
 0xdde   :  { %v1234_v2 = vadd.f32 0.5, %v1233_v63 }
 0xde0   :  { %v1240_v6 = vmul.f32 %v1238_v3, %v1234_v2  ;;  %v1247_v15 = vsub.f32 1.0, %v1234_v2  ;;  %v1253_v18 = vmul.f32 %v1234_v2, %v4547_v21  ;;  %v1403_v21 = vpop.f32.mrb[14].mxu1 }
 0xde1   :  { %v3806_v23 = vpop.f32.mrb[15].mxu1  ;;  %v1404_v34 = vadd.f32 %v4417_v17, %v1403_v21 }
 0xde2   :  { %1242 = vrot.lane.b32.xlu1 %v1240_v6, %s4345_s29 }
 0xe54   :  { %v1243_v7 = vpop.permute.xlu1 %1242 }
 0xe55   :  { %v1245_v9 = vadd.f32 %v1243_v7, %v1157_v58 }
 0xe57   :  { %4269 = vtanh.f32 %v1245_v9 }
 0xe61   :  { %v4270_v12 = vpop.eup %4269 }
 0xe62   :  { %1249 = vrot.lane.b32.xlu0 %v4270_v12, %s4346_s5 }
 0xed4   :  { %v1250_v16 = vpop.permute.xlu0 %1249 }
 0xed5   :  { %v1252_v19 = vmul.f32 %v1250_v16, %v1247_v15 }
 0xed7   :  { %v4607_v22 = vadd.f32 %v1253_v18, %v1252_v19 }
 0xed9   :  { %1256 = vrot.lane.b32.xlu1 %v4607_v22, %s4346_s5 }
 0xf4b   :  { %v1257_v20 = vpop.permute.xlu1 %1256 }
 0xf4c   :  { %3800 = vmatmul.mubr.msk.f32.vlgmr.msra.gmra.mrb[14].mxu0 %vm129_vm2, %v1257_v20 }
 0xf4d   :  { %4121 = vmatpush3.bf16.msra.mxu0 %v4387_v5  ;;  %3815 = vmatprep.mubr.msk.f32.mxu0 %vm4344_vm0, %v4343_v1 }
 0xf4e   :  { %4122 = vmatprep.subr.bf16.mxu0 %v4342_v0 }
 0xf51   :  { %4124 = vmatpush3.bf16.msra.mxu0 %v4399_v10 }
 0xf52   :  { %4131 = vmatprep.subr.bf16.mxu0 %v4342_v0 }
 0xf54   :  { %3816 = vmatmul.mubr.msk.f32.vlgmr.msra.gmra.mrb[16].mxu0 %vm129_vm2, %v1087_v46 }
 0xf55   :  { %4133 = vmatpush3.bf16.msra.mxu0 %v4421_v31  ;;  %3837 = vmatprep.mubr.msk.f32.mxu0 %vm4344_vm0, %v4343_v1 }
 0xf56   :  { %4134 = vmatprep.subr.bf16.mxu0 %v4342_v0 }
 0xf59   :  { %4136 = vmatpush3.bf16.msra.mxu0 %v4426_v38 }
 0xf5a   :  { %3851 = vmatprep.subr.mxu0 %v4343_v1 }
 0xf5c   :  { %3838 = vmatmul.mubr.msk.f32.vlgmr.msra.gmra.mrb[18].mxu0 %vm129_vm2, %v1257_v20 }
 0xf5d   :  { %3852 = vmatpush3.msra.mxu0 %v4385_v4  ;;  %3853 = vmatprep.mubr.msk.f32.mxu0 %vm4344_vm0, %v4343_v1 }
 0xf5e   :  { %4149 = vmatprep.subr.bf16.mxu0 %v4342_v0 }
 0xf60   :  { %3854 = vmatmul.mubr.msk.f32.vlgmr.msra.gmra.mrb[20].mxu0 %vm55_vm1, %v3451_v14  ;;  %v3458_v14 = vld [vmem:[%s4910_s0 + $0xa] sm:$0x3] }
 0xf61   :  { %4151 = vmatpush3.bf16.msra.mxu0 %v4423_v35  ;;  %3875 = vmatprep.mubr.msk.f32.mxu0 %vm4344_vm0, %v4343_v1 }
 0xf62   :  { %4152 = vmatprep.subr.bf16.mxu0 %v4342_v0 }
 0xf65   :  { %4154 = vmatpush3.bf16.msra.mxu0 %v4430_v39 }
 0xf66   :  { %4161 = vmatprep.subr.bf16.mxu0 %v4342_v0 }
0x101f   :  { %v1326_v25 = vpop.f32.mrb[14].mxu0 }
0x1020   :  { %v1327_v26 = vadd.f32 %v4510_v24, %v1326_v25  ;;  %v3801_v27 = vpop.f32.mrb[15].mxu0 }
0x1022   :  { %3443 = vst [vmem:[%s4913_s3 + $0x4] sm:$0x3] %v1327_v26 }
0x1027   :  { %v1473_v28 = vpop.f32.mrb[16].mxu0 }
0x1028   :  { %v1482_v29 = vadd.f32 %v1473_v28, %v4410_v13  ;;  %v3817_v30 = vpop.f32.mrb[17].mxu0  ;;  %v1477_v36 = vadd.f32 %v1473_v28, %v1404_v34 }
0x102a   :  { %1484 = vrot.lane.b32.xlu0 %v1482_v29, %s4345_s29  ;;  %v1478_v37 = vmul.f32 0.5, %v1477_v36 }
0x102c   :  { %4271 = vtanh.f32 %v1478_v37 }
0x102f   :  { %v1643_v32 = vpop.f32.mrb[18].mxu0 }
0x1030   :  { %v3839_v33 = vpop.f32.mrb[19].mxu0  ;;  %v1652_v50 = vadd.f32 %v1643_v32, %v4451_v49 }
0x1036   :  { %v4272_v40 = vpop.eup %4271 }
0x1037   :  { %v1480_v41 = vmul.f32 0.5, %v4272_v40 }
0x1039   :  { %v1481_v42 = vadd.f32 0.5, %v1480_v41 }
0x103b   :  { %v1494_v51 = vsub.f32 1.0, %v1481_v42  ;;  %v1500_v54 = vmul.f32 %v1481_v42, %v4584_v57 }
0x109c   :  { %v1485_v43 = vpop.permute.xlu0 %1484 }
0x109d   :  { %v1487_v44 = vmul.f32 %v1485_v43, %v1481_v42 }
0x109f   :  { %1489 = vrot.lane.b32.xlu1 %v1487_v44, %s4345_s29 }
0x1111   :  { %v1490_v45 = vpop.permute.xlu1 %1489 }
0x1112   :  { %v1492_v47 = vadd.f32 %v1490_v45, %v1404_v34 }
0x1114   :  { %4273 = vtanh.f32 %v1492_v47 }
0x111e   :  { %v4274_v48 = vpop.eup %4273 }
0x111f   :  { %1496 = vrot.lane.b32.xlu0 %v4274_v48, %s4346_s5 }
0x1123   :  { %1654 = vrot.lane.b32.xlu0 %v1652_v50, %s4345_s29 }
0x1191   :  { %v1497_v53 = vpop.permute.xlu0 %1496 }
0x1192   :  { %v1499_v55 = vmul.f32 %v1497_v53, %v1494_v51 }
0x1194   :  { %v4644_v46 = vadd.f32 %v1500_v54, %v1499_v55 }
0x1195   :  { %v1655_v3 = vpop.permute.xlu0 %1654 }
0x1196   :  { %1503 = vrot.lane.b32.xlu1 %v4644_v46, %s4346_s5 }
0x1208   :  { %v1504_v56 = vpop.permute.xlu1 %1503 }
0x1209   :  { %3827 = vmatmul.mubr.msk.f32.vlgmr.msra.gmra.mrb[16].mxu1 %vm129_vm2, %v1504_v56 }
0x120a   :  { %4139 = vmatpush3.bf16.msra.mxu1 %v4465_v8  ;;  %3848 = vmatprep.mubr.msk.f32.mxu1 %vm4344_vm0, %v4343_v1 }
0x120b   :  { %4140 = vmatprep.subr.bf16.mxu1 %v4342_v0 }
0x120e   :  { %4142 = vmatpush3.bf16.msra.mxu1 %v4468_v11 }
0x120f   :  { %4143 = vmatprep.subr.bf16.mxu1 %v4342_v0 }
0x12dc   :  { %v1573_v57 = vpop.f32.mrb[16].mxu1 }
0x12dd   :  { %v1574_v58 = vadd.f32 %v4461_v52, %v1573_v57  ;;  %v3828_v59 = vpop.f32.mrb[17].mxu1 }
0x12df   :  { %v1647_v60 = vadd.f32 %v1643_v32, %v1574_v58 }
0x12e1   :  { %v1648_v61 = vmul.f32 0.5, %v1647_v60 }
0x12e3   :  { %4275 = vtanh.f32 %v1648_v61 }
0x12ed   :  { %v4276_v62 = vpop.eup %4275 }
0x12ee   :  { %v1650_v63 = vmul.f32 0.5, %v4276_v62 }
0x12f0   :  { %v1651_v2 = vadd.f32 0.5, %v1650_v63 }
0x12f2   :  { %v1657_v6 = vmul.f32 %v1655_v3, %v1651_v2  ;;  %v1664_v15 = vsub.f32 1.0, %v1651_v2  ;;  %v1670_v18 = vmul.f32 %v1651_v2, %v4607_v22  ;;  %v1820_v22 = vpop.f32.mrb[20].mxu0 }
0x12f3   :  { %v3855_v23 = vpop.f32.mrb[21].mxu0  ;;  %v1821_v34 = vadd.f32 %v4417_v17, %v1820_v22 }
0x12f4   :  { %1659 = vrot.lane.b32.xlu1 %v1657_v6, %s4345_s29 }
0x1366   :  { %v1660_v7 = vpop.permute.xlu1 %1659 }
0x1367   :  { %v1662_v9 = vadd.f32 %v1660_v7, %v1574_v58 }
0x1369   :  { %4277 = vtanh.f32 %v1662_v9 }
0x1373   :  { %v4278_v12 = vpop.eup %4277 }
0x1374   :  { %1666 = vrot.lane.b32.xlu0 %v4278_v12, %s4346_s5 }
0x13e6   :  { %v1667_v16 = vpop.permute.xlu0 %1666 }
0x13e7   :  { %v1669_v19 = vmul.f32 %v1667_v16, %v1664_v15 }
0x13e9   :  { %v4667_v20 = vadd.f32 %v1670_v18, %v1669_v19 }
0x13eb   :  { %1673 = vrot.lane.b32.xlu1 %v4667_v20, %s4346_s5 }
0x145d   :  { %v1674_v21 = vpop.permute.xlu1 %1673 }
0x145e   :  { %3849 = vmatmul.mubr.msk.f32.vlgmr.msra.gmra.mrb[18].mxu1 %vm129_vm2, %v1674_v21 }
0x145f   :  { %4145 = vmatpush3.bf16.msra.mxu1 %v4387_v5  ;;  %3864 = vmatprep.mubr.msk.f32.mxu1 %vm4344_vm0, %v4343_v1 }
0x1460   :  { %4146 = vmatprep.subr.bf16.mxu1 %v4342_v0 }
0x1463   :  { %4148 = vmatpush3.bf16.msra.mxu1 %v4399_v10 }
0x1464   :  { %4155 = vmatprep.subr.bf16.mxu1 %v4342_v0 }
0x1466   :  { %3865 = vmatmul.mubr.msk.f32.vlgmr.msra.gmra.mrb[20].mxu1 %vm129_vm2, %v1504_v56 }
0x1467   :  { %4157 = vmatpush3.bf16.msra.mxu1 %v4421_v31  ;;  %3886 = vmatprep.mubr.msk.f32.mxu1 %vm4344_vm0, %v4343_v1 }
0x1468   :  { %4158 = vmatprep.subr.bf16.mxu1 %v4342_v0 }
0x146b   :  { %4160 = vmatpush3.bf16.msra.mxu1 %v4426_v38 }
0x146c   :  { %3900 = vmatprep.subr.mxu1 %v4343_v1 }
0x146e   :  { %3887 = vmatmul.mubr.msk.f32.vlgmr.msra.gmra.mrb[22].mxu1 %vm129_vm2, %v1674_v21 }
0x146f   :  { %3901 = vmatpush3.msra.mxu1 %v4385_v4  ;;  %3902 = vmatprep.mubr.msk.f32.mxu1 %vm4344_vm0, %v4343_v1 }
0x1470   :  { %4173 = vmatprep.subr.bf16.mxu1 %v4342_v0 }
0x1472   :  { %3903 = vmatmul.mubr.msk.f32.vlgmr.msra.gmra.mrb[24].mxu1 %vm55_vm1, %v3458_v14 }
0x1473   :  { %4175 = vmatpush3.bf16.msra.mxu1 %v4423_v35  ;;  %3924 = vmatprep.mubr.msk.f32.mxu1 %vm4344_vm0, %v4343_v1 }
0x1474   :  { %4176 = vmatprep.subr.bf16.mxu1 %v4342_v0 }
0x1477   :  { %4178 = vmatpush3.bf16.msra.mxu1 %v4430_v39 }
0x1478   :  { %4185 = vmatprep.subr.bf16.mxu1 %v4342_v0 }
0x1531   :  { %v1743_v25 = vpop.f32.mrb[18].mxu1 }
0x1532   :  { %v1744_v26 = vadd.f32 %v4510_v24, %v1743_v25  ;;  %v3850_v27 = vpop.f32.mrb[19].mxu1 }
0x1534   :  { %3450 = vst [vmem:[%s4913_s3 + $0x6] sm:$0x3] %v1744_v26 }
0x1539   :  { %v1890_v28 = vpop.f32.mrb[20].mxu1 }
0x153a   :  { %v1899_v29 = vadd.f32 %v1890_v28, %v4410_v13  ;;  %v3866_v30 = vpop.f32.mrb[21].mxu1  ;;  %v1894_v36 = vadd.f32 %v1890_v28, %v1821_v34 }
0x153c   :  { %1901 = vrot.lane.b32.xlu0 %v1899_v29, %s4345_s29  ;;  %v1895_v37 = vmul.f32 0.5, %v1894_v36 }
0x153e   :  { %4279 = vtanh.f32 %v1895_v37 }
0x1541   :  { %v2060_v32 = vpop.f32.mrb[22].mxu1 }
0x1542   :  { %v3888_v33 = vpop.f32.mrb[23].mxu1  ;;  %v2069_v50 = vadd.f32 %v2060_v32, %v4451_v49 }
0x1548   :  { %v4280_v40 = vpop.eup %4279 }
0x1549   :  { %v1897_v41 = vmul.f32 0.5, %v4280_v40 }
0x154b   :  { %v1898_v42 = vadd.f32 0.5, %v1897_v41 }
0x154d   :  { %v1911_v51 = vsub.f32 1.0, %v1898_v42  ;;  %v1917_v54 = vmul.f32 %v1898_v42, %v4644_v46 }
0x15ae   :  { %v1902_v43 = vpop.permute.xlu0 %1901 }
0x15af   :  { %v1904_v44 = vmul.f32 %v1902_v43, %v1898_v42 }
0x15b1   :  { %1906 = vrot.lane.b32.xlu1 %v1904_v44, %s4345_s29 }
0x1623   :  { %v1907_v45 = vpop.permute.xlu1 %1906 }
0x1624   :  { %v1909_v47 = vadd.f32 %v1907_v45, %v1821_v34 }
0x1626   :  { %4281 = vtanh.f32 %v1909_v47 }
0x1630   :  { %v4282_v48 = vpop.eup %4281 }
0x1631   :  { %1913 = vrot.lane.b32.xlu0 %v4282_v48, %s4346_s5 }
0x1635   :  { %2071 = vrot.lane.b32.xlu0 %v2069_v50, %s4345_s29 }
0x16a3   :  { %v1914_v53 = vpop.permute.xlu0 %1913 }
0x16a4   :  { %v1916_v55 = vmul.f32 %v1914_v53, %v1911_v51 }
0x16a6   :  { %v4704_v56 = vadd.f32 %v1917_v54, %v1916_v55 }
0x16a7   :  { %v2072_v3 = vpop.permute.xlu0 %2071 }
0x16a8   :  { %1920 = vrot.lane.b32.xlu1 %v4704_v56, %s4346_s5 }
0x171a   :  { %v1921_v57 = vpop.permute.xlu1 %1920 }
0x171b   :  { %3876 = vmatmul.mubr.msk.f32.vlgmr.msra.gmra.mrb[22].mxu0 %vm129_vm2, %v1921_v57 }
0x171c   :  { %4163 = vmatpush3.bf16.msra.mxu0 %v4465_v8  ;;  %3897 = vmatprep.mubr.msk.f32.mxu0 %vm4344_vm0, %v4343_v1 }
0x171d   :  { %4164 = vmatprep.subr.bf16.mxu0 %v4342_v0 }
0x1720   :  { %4166 = vmatpush3.bf16.msra.mxu0 %v4468_v11 }
0x1721   :  { %4167 = vmatprep.subr.bf16.mxu0 %v4342_v0 }
0x17ee   :  { %v1990_v46 = vpop.f32.mrb[22].mxu0 }
0x17ef   :  { %v1991_v58 = vadd.f32 %v4461_v52, %v1990_v46  ;;  %v3877_v59 = vpop.f32.mrb[23].mxu0 }
0x17f1   :  { %v2064_v60 = vadd.f32 %v2060_v32, %v1991_v58 }
0x17f3   :  { %v2065_v61 = vmul.f32 0.5, %v2064_v60 }
0x17f5   :  { %4283 = vtanh.f32 %v2065_v61 }
0x17ff   :  { %v4284_v62 = vpop.eup %4283 }
0x1800   :  { %v2067_v63 = vmul.f32 0.5, %v4284_v62 }
0x1802   :  { %v2068_v2 = vadd.f32 0.5, %v2067_v63 }
0x1804   :  { %v2074_v6 = vmul.f32 %v2072_v3, %v2068_v2  ;;  %v2081_v15 = vsub.f32 1.0, %v2068_v2  ;;  %v2087_v18 = vmul.f32 %v2068_v2, %v4667_v20  ;;  %v2237_v20 = vpop.f32.mrb[24].mxu1 }
0x1805   :  { %v3904_v23 = vpop.f32.mrb[25].mxu1  ;;  %v2238_v33 = vadd.f32 %v4417_v17, %v2237_v20 }
0x1806   :  { %2076 = vrot.lane.b32.xlu1 %v2074_v6, %s4345_s29 }
0x1878   :  { %v2077_v7 = vpop.permute.xlu1 %2076 }
0x1879   :  { %v2079_v9 = vadd.f32 %v2077_v7, %v1991_v58 }
0x187b   :  { %4285 = vtanh.f32 %v2079_v9 }
0x1885   :  { %v4286_v12 = vpop.eup %4285 }
0x1886   :  { %2083 = vrot.lane.b32.xlu0 %v4286_v12, %s4346_s5 }
0x18f8   :  { %v2084_v16 = vpop.permute.xlu0 %2083 }
0x18f9   :  { %v2086_v19 = vmul.f32 %v2084_v16, %v2081_v15 }
0x18fb   :  { %v4727_v21 = vadd.f32 %v2087_v18, %v2086_v19  ;;  %v4311_v19 = vld [vmem:[#allocation2] sm:$0xff] }
0x18fd   :  { %2090 = vrot.lane.b32.xlu1 %v4727_v21, %s4346_s5 }
0x196f   :  { %v2091_v22 = vpop.permute.xlu1 %2090 }
0x1970   :  { %3898 = vmatmul.mubr.msk.f32.vlgmr.msra.gmra.mrb[24].mxu0 %vm129_vm2, %v2091_v22 }
0x1971   :  { %4169 = vmatpush3.bf16.msra.mxu0 %v4387_v5  ;;  %3913 = vmatprep.mubr.msk.f32.mxu0 %vm4344_vm0, %v4343_v1 }
0x1972   :  { %4170 = vmatprep.subr.bf16.mxu0 %v4342_v0 }
0x1975   :  { %4172 = vmatpush3.bf16.msra.mxu0 %v4399_v10 }
0x1976   :  { %4179 = vmatprep.subr.bf16.mxu0 %v4342_v0 }
0x1978   :  { %3914 = vmatmul.mubr.msk.f32.vlgmr.msra.gmra.mrb[26].mxu0 %vm129_vm2, %v1921_v57 }
0x1979   :  { %4181 = vmatpush3.bf16.msra.mxu0 %v4421_v31  ;;  %3935 = vmatprep.mubr.msk.f32.mxu0 %vm4344_vm0, %v4343_v1 }
0x197a   :  { %4182 = vmatprep.subr.bf16.mxu0 %v4342_v0 }
0x197d   :  { %4184 = vmatpush3.bf16.msra.mxu0 %v4426_v38 }
0x197e   :  { %3949 = vmatprep.subr.mxu0 %v4343_v1 }
0x1980   :  { %3936 = vmatmul.mubr.msk.f32.vlgmr.msra.gmra.mrb[28].mxu0 %vm129_vm2, %v2091_v22 }
0x1981   :  { %3950 = vmatpush3.msra.mxu0 %v4385_v4  ;;  %3951 = vmatprep.mubr.msk.f32.mxu0 %vm4344_vm0, %v4343_v1 }
0x1982   :  { %4197 = vmatprep.subr.bf16.mxu0 %v4342_v0 }
0x1a43   :  { %v2160_v25 = vpop.f32.mrb[24].mxu0 }
0x1a44   :  { %v2161_v26 = vadd.f32 %v4510_v24, %v2160_v25  ;;  %v3899_v27 = vpop.f32.mrb[25].mxu0 }
0x1a46   :  { %3457 = vst [vmem:[%s4913_s3 + $0x8] sm:$0x3] %v2161_v26 }
0x1a4b   :  { %v2307_v28 = vpop.f32.mrb[26].mxu0 }
0x1a4c   :  { %v2316_v29 = vadd.f32 %v2307_v28, %v4410_v13  ;;  %v3915_v30 = vpop.f32.mrb[27].mxu0  ;;  %v2311_v34 = vadd.f32 %v2307_v28, %v2238_v33 }
0x1a4e   :  { %2318 = vrot.lane.b32.xlu0 %v2316_v29, %s4345_s29  ;;  %v2312_v36 = vmul.f32 0.5, %v2311_v34 }
0x1a50   :  { %4287 = vtanh.f32 %v2312_v36 }
0x1a53   :  { %v2477_v4 = vpop.f32.mrb[28].mxu0 }
0x1a54   :  { %v3937_v32 = vpop.f32.mrb[29].mxu0  ;;  %v2486_v48 = vadd.f32 %v2477_v4, %v4451_v49 }
0x1a5a   :  { %v4288_v37 = vpop.eup %4287 }
0x1a5b   :  { %v2314_v40 = vmul.f32 0.5, %v4288_v37 }
0x1a5d   :  { %v2315_v41 = vadd.f32 0.5, %v2314_v40 }
0x1a5f   :  { %v2328_v17 = vsub.f32 1.0, %v2315_v41  ;;  %v2334_v51 = vmul.f32 %v2315_v41, %v4704_v56 }
0x1ac0   :  { %v2319_v42 = vpop.permute.xlu0 %2318 }
0x1ac1   :  { %v2321_v43 = vmul.f32 %v2319_v42, %v2315_v41 }
0x1ac3   :  { %2323 = vrot.lane.b32.xlu1 %v2321_v43, %s4345_s29 }
0x1b35   :  { %v2324_v44 = vpop.permute.xlu1 %2323 }
0x1b36   :  { %v2326_v45 = vadd.f32 %v2324_v44, %v2238_v33 }
0x1b38   :  { %4289 = vtanh.f32 %v2326_v45 }
0x1b42   :  { %v4290_v47 = vpop.eup %4289 }
0x1b43   :  { %2330 = vrot.lane.b32.xlu0 %v4290_v47, %s4346_s5 }
0x1b47   :  { %2488 = vrot.lane.b32.xlu0 %v2486_v48, %s4345_s29 }
0x1bb5   :  { %v2331_v50 = vpop.permute.xlu0 %2330 }
0x1bb6   :  { %v2333_v53 = vmul.f32 %v2331_v50, %v2328_v17 }
0x1bb8   :  { %v4764_v54 = vadd.f32 %v2334_v51, %v2333_v53 }
0x1bb9   :  { %v2489_v63 = vpop.permute.xlu0 %2488 }
0x1bba   :  { %2337 = vrot.lane.b32.xlu1 %v4764_v54, %s4346_s5 }
0x1c2c   :  { %v2338_v55 = vpop.permute.xlu1 %2337 }
0x1c2d   :  { %3925 = vmatmul.mubr.msk.f32.vlgmr.msra.gmra.mrb[26].mxu1 %vm129_vm2, %v2338_v55 }
0x1c2e   :  { %4187 = vmatpush3.bf16.msra.mxu1 %v4465_v8  ;;  %3946 = vmatprep.mubr.msk.f32.mxu1 %vm4344_vm0, %v4343_v1 }
0x1c2f   :  { %4188 = vmatprep.subr.bf16.mxu1 %v4342_v0 }
0x1c32   :  { %4190 = vmatpush3.bf16.msra.mxu1 %v4468_v11 }
0x1c33   :  { %4191 = vmatprep.subr.bf16.mxu1 %v4342_v0 }
0x1d00   :  { %v2407_v56 = vpop.f32.mrb[26].mxu1 }
0x1d01   :  { %v2408_v57 = vadd.f32 %v4461_v52, %v2407_v56  ;;  %v3926_v46 = vpop.f32.mrb[27].mxu1  ;;  %v3465_v52 = vld [vmem:[%s4910_s0 + $0xc] sm:$0x3] }
0x1d02   :  { %3952 = vmatmul.mubr.msk.f32.vlgmr.msra.gmra.mrb[30].mxu0 %vm55_vm1, %v3465_v52 }
0x1d03   :  { %v2481_v58 = vadd.f32 %v2477_v4, %v2408_v57  ;;  %4199 = vmatpush3.bf16.msra.mxu0 %v4423_v35  ;;  %3973 = vmatprep.mubr.msk.f32.mxu0 %vm4344_vm0, %v4343_v1  ;;  %v4820_v4 = vld [vmem:[%s4912_s2] ss:$0 sm:$0xff] }
0x1d04   :  { %4200 = vmatprep.subr.bf16.mxu0 %v4342_v0 }
0x1d05   :  { %v2482_v59 = vmul.f32 0.5, %v2481_v58 }
0x1d07   :  { %4291 = vtanh.f32 %v2482_v59  ;;  %4202 = vmatpush3.bf16.msra.mxu0 %v4430_v39 }
0x1d08   :  { %4209 = vmatprep.subr.bf16.mxu0 %v4342_v0 }
0x1d11   :  { %v4292_v60 = vpop.eup %4291 }
0x1d12   :  { %v2484_v61 = vmul.f32 0.5, %v4292_v60 }
0x1d14   :  { %v2485_v62 = vadd.f32 0.5, %v2484_v61 }
0x1d16   :  { %v2491_v2 = vmul.f32 %v2489_v63, %v2485_v62  ;;  %v2498_v9 = vsub.f32 1.0, %v2485_v62  ;;  %v2504_v14 = vmul.f32 %v2485_v62, %v4727_v21 }
0x1d18   :  { %2493 = vrot.lane.b32.xlu1 %v2491_v2, %s4345_s29 }
0x1d8a   :  { %v2494_v3 = vpop.permute.xlu1 %2493 }
0x1d8b   :  { %v2496_v6 = vadd.f32 %v2494_v3, %v2408_v57 }
0x1d8d   :  { %4293 = vtanh.f32 %v2496_v6 }
0x1d97   :  { %v4294_v7 = vpop.eup %4293 }
0x1d98   :  { %2500 = vrot.lane.b32.xlu0 %v4294_v7, %s4346_s5  ;;  %v3472_v7 = vld [vmem:[%s4910_s0 + $0xe] sm:$0x3] }
0x1dd5   :  { %v2654_v21 = vpop.f32.mrb[30].mxu0 }
0x1dd6   :  { %v3953_v22 = vpop.f32.mrb[31].mxu0 }
0x1e0a   :  { %v2501_v12 = vpop.permute.xlu0 %2500 }
0x1e0b   :  { %v2503_v15 = vmul.f32 %v2501_v12, %v2498_v9 }
0x1e0d   :  { %v4787_v16 = vadd.f32 %v2504_v14, %v2503_v15 }
0x1e0f   :  { %2507 = vrot.lane.b32.xlu1 %v4787_v16, %s4346_s5 }
0x1e81   :  { %v2508_v18 = vpop.permute.xlu1 %2507 }
0x1e82   :  { %3947 = vmatmul.mubr.msk.f32.vlgmr.msra.gmra.mrb[28].mxu1 %vm129_vm2, %v2508_v18 }
0x1e83   :  { %4193 = vmatpush3.bf16.msra.mxu1 %v4387_v5  ;;  %3962 = vmatprep.mubr.msk.f32.mxu1 %vm4344_vm0, %v4343_v1 }
0x1e84   :  { %4194 = vmatprep.subr.bf16.mxu1 %v4342_v0 }
0x1e87   :  { %4196 = vmatpush3.bf16.msra.mxu1 %v4399_v10 }
0x1e88   :  { %4203 = vmatprep.subr.bf16.mxu1 %v4342_v0 }
0x1e8a   :  { %3963 = vmatmul.mubr.msk.f32.vlgmr.msra.gmra.mrb[30].mxu1 %vm129_vm2, %v2338_v55  ;;  %v4842_v55 = vld [vmem:[%s4912_s2 + $0x2] ss:$0 sm:$0xff] }
0x1e8b   :  { %4205 = vmatpush3.bf16.msra.mxu1 %v4421_v31  ;;  %3984 = vmatprep.mubr.msk.f32.mxu1 %vm4344_vm0, %v4343_v1 }
0x1e8c   :  { %4206 = vmatprep.subr.bf16.mxu1 %v4342_v0 }
0x1e8f   :  { %4208 = vmatpush3.bf16.msra.mxu1 %v4426_v38 }
0x1e90   :  { %3998 = vmatprep.subr.mxu1 %v4343_v1 }
0x1e92   :  { %3985 = vmatmul.mubr.msk.f32.vlgmr.msra.gmra.mrb[32].mxu1 %vm129_vm2, %v2508_v18 }
0x1e93   :  { %3999 = vmatpush3.msra.mxu1 %v4311_v19  ;;  %4000 = vmatprep.mubr.msk.f32.mxu1 %vm4344_vm0, %v4343_v1 }
0x1e94   :  { %4221 = vmatprep.subr.bf16.mxu1 %v4342_v0 }
0x1e96   :  { %4001 = vmatmul.mubr.msk.f32.vlgmr.msra.gmra.mrb[34].mxu1 %vm55_vm1, %v3472_v7 }
0x1e97   :  { %4223 = vmatpush3.bf16.msra.mxu1 %v4423_v35  ;;  %4022 = vmatprep.mubr.msk.f32.mxu1 %vm4344_vm0, %v4343_v1 }
0x1e98   :  { %4224 = vmatprep.subr.bf16.mxu1 %v4342_v0 }
0x1e9b   :  { %4226 = vmatpush3.bf16.msra.mxu1 %v4430_v39 }
0x1e9c   :  { %4233 = vmatprep.subr.bf16.mxu1 %v4342_v0 }
0x1f55   :  { %v2577_v20 = vpop.f32.mrb[28].mxu1 }
0x1f56   :  { %v2578_v23 = vadd.f32 %v4510_v24, %v2577_v20  ;;  %v3948_v25 = vpop.f32.mrb[29].mxu1  ;;  %v2655_v24 = vadd.f32 %v4820_v4, %v2654_v21 }
0x1f58   :  { %3464 = vst [vmem:[%s4913_s3 + $0xa] sm:$0x3] %v2578_v23 }
0x1f5d   :  { %v2724_v26 = vpop.f32.mrb[30].mxu1 }
0x1f5e   :  { %v2733_v27 = vadd.f32 %v2724_v26, %v4410_v13  ;;  %v3964_v28 = vpop.f32.mrb[31].mxu1  ;;  %v2728_v32 = vadd.f32 %v2724_v26, %v2655_v24 }
0x1f60   :  { %2735 = vrot.lane.b32.xlu0 %v2733_v27, %s4345_s29  ;;  %v2729_v33 = vmul.f32 0.5, %v2728_v32 }
0x1f62   :  { %4295 = vtanh.f32 %v2729_v33 }
0x1f65   :  { %v2894_v29 = vpop.f32.mrb[32].mxu1 }
0x1f66   :  { %v3986_v30 = vpop.f32.mrb[33].mxu1  ;;  %v2903_v45 = vadd.f32 %v2894_v29, %v4451_v49 }
0x1f6c   :  { %v4296_v34 = vpop.eup %4295 }
0x1f6d   :  { %v2731_v36 = vmul.f32 0.5, %v4296_v34 }
0x1f6f   :  { %v2732_v37 = vadd.f32 0.5, %v2731_v36 }
0x1f71   :  { %v2745_v47 = vsub.f32 1.0, %v2732_v37  ;;  %v2751_v17 = vmul.f32 %v2732_v37, %v4764_v54 }
0x1fd2   :  { %v2736_v40 = vpop.permute.xlu0 %2735 }
0x1fd3   :  { %v2738_v41 = vmul.f32 %v2736_v40, %v2732_v37 }
0x1fd5   :  { %2740 = vrot.lane.b32.xlu1 %v2738_v41, %s4345_s29 }
0x2047   :  { %v2741_v42 = vpop.permute.xlu1 %2740 }
0x2048   :  { %v2743_v43 = vadd.f32 %v2741_v42, %v2655_v24 }
0x204a   :  { %4297 = vtanh.f32 %v2743_v43 }
0x2054   :  { %v4298_v44 = vpop.eup %4297 }
0x2055   :  { %2747 = vrot.lane.b32.xlu0 %v4298_v44, %s4346_s5 }
0x2059   :  { %2905 = vrot.lane.b32.xlu0 %v2903_v45, %s4345_s29 }
0x20c7   :  { %v2748_v48 = vpop.permute.xlu0 %2747 }
0x20c8   :  { %v2750_v50 = vmul.f32 %v2748_v48, %v2745_v47 }
0x20ca   :  { %v4828_v51 = vadd.f32 %v2751_v17, %v2750_v50 }
0x20cb   :  { %v2906_v62 = vpop.permute.xlu0 %2905 }
0x20cc   :  { %2754 = vrot.lane.b32.xlu1 %v4828_v51, %s4346_s5 }
0x213e   :  { %v2755_v53 = vpop.permute.xlu1 %2754 }
0x213f   :  { %3974 = vmatmul.mubr.msk.f32.vlgmr.msra.gmra.mrb[32].mxu0 %vm129_vm2, %v2755_v53 }
0x2140   :  { %4211 = vmatpush3.bf16.msra.mxu0 %v4465_v8  ;;  %3995 = vmatprep.mubr.msk.f32.mxu0 %vm4344_vm0, %v4343_v1 }
0x2141   :  { %4212 = vmatprep.subr.bf16.mxu0 %v4342_v0 }
0x2144   :  { %4214 = vmatpush3.bf16.msra.mxu0 %v4468_v11 }
0x2145   :  { %4215 = vmatprep.subr.bf16.mxu0 %v4342_v0 }
0x2212   :  { %v2824_v54 = vpop.f32.mrb[32].mxu0 }
0x2213   :  { %v2825_v56 = vadd.f32 %v4842_v55, %v2824_v54  ;;  %v3975_v57 = vpop.f32.mrb[33].mxu0 }
0x2215   :  { %v2898_v46 = vadd.f32 %v2894_v29, %v2825_v56 }
0x2217   :  { %v2899_v58 = vmul.f32 0.5, %v2898_v46 }
0x2219   :  { %4299 = vtanh.f32 %v2899_v58 }
0x2223   :  { %v4300_v59 = vpop.eup %4299 }
0x2224   :  { %v2901_v60 = vmul.f32 0.5, %v4300_v59 }
0x2226   :  { %v2902_v61 = vadd.f32 0.5, %v2901_v60 }
0x2228   :  { %v2908_v63 = vmul.f32 %v2906_v62, %v2902_v61  ;;  %v2915_v52 = vsub.f32 1.0, %v2902_v61  ;;  %v2921_v12 = vmul.f32 %v2902_v61, %v4787_v16 }
0x222a   :  { %2910 = vrot.lane.b32.xlu1 %v2908_v63, %s4345_s29 }
0x229c   :  { %v2911_v2 = vpop.permute.xlu1 %2910 }
0x229d   :  { %v2913_v3 = vadd.f32 %v2911_v2, %v2825_v56 }
0x229f   :  { %4301 = vtanh.f32 %v2913_v3 }
0x22a9   :  { %v4302_v6 = vpop.eup %4301 }
0x22aa   :  { %2917 = vrot.lane.b32.xlu0 %v4302_v6, %s4346_s5 }
0x231c   :  { %v2918_v9 = vpop.permute.xlu0 %2917 }
0x231d   :  { %v2920_v14 = vmul.f32 %v2918_v9, %v2915_v52 }
0x231f   :  { %v4856_v15 = vadd.f32 %v2921_v12, %v2920_v14 }
0x2321   :  { %2924 = vrot.lane.b32.xlu1 %v4856_v15, %s4346_s5 }
0x2393   :  { %v2925_v18 = vpop.permute.xlu1 %2924 }
0x2394   :  { %3996 = vmatmul.mubr.msk.f32.vlgmr.msra.gmra.mrb[34].mxu0 %vm129_vm2, %v2925_v18 }
0x2395   :  { %4217 = vmatpush3.bf16.msra.mxu0 %v4387_v5  ;;  %4011 = vmatprep.mubr.msk.f32.mxu0 %vm4344_vm0, %v4343_v1  ;;  %v3071_v5 = vpop.f32.mrb[34].mxu1 }
0x2396   :  { %4218 = vmatprep.subr.bf16.mxu0 %v4342_v0  ;;  %v4002_v35 = vpop.f32.mrb[35].mxu1  ;;  %v3072_v23 = vadd.f32 %v4820_v4, %v3071_v5 }
0x2399   :  { %4220 = vmatpush3.bf16.msra.mxu0 %v4399_v10  ;;  %v4879_v10 = vld [vmem:[%s4912_s2 + $0x4] ss:$0 sm:$0xff] }
0x239a   :  { %4227 = vmatprep.subr.bf16.mxu0 %v4342_v0 }
0x239c   :  { %4012 = vmatmul.mubr.msk.f32.vlgmr.msra.gmra.mrb[36].mxu0 %vm129_vm2, %v2755_v53 }
0x239d   :  { %4229 = vmatpush3.bf16.msra.mxu0 %v4421_v31  ;;  %4033 = vmatprep.mubr.msk.f32.mxu0 %vm4344_vm0, %v4343_v1 }
0x239e   :  { %4230 = vmatprep.subr.bf16.mxu0 %v4342_v0 }
0x23a1   :  { %4232 = vmatpush3.bf16.msra.mxu0 %v4426_v38 }
0x23a4   :  { %4034 = vmatmul.mubr.msk.f32.vlgmr.msra.gmra.mrb[38].mxu0 %vm129_vm2, %v2925_v18 }
0x2467   :  { %v2994_v39 = vpop.f32.mrb[34].mxu0 }
0x2468   :  { %v2995_v16 = vadd.f32 %v4879_v10, %v2994_v39  ;;  %v3997_v31 = vpop.f32.mrb[35].mxu0 }
0x246a   :  { %3471 = vst [vmem:[%s4913_s3 + $0xc] sm:$0x3] %v2995_v16 }
0x246f   :  { %v3141_v19 = vpop.f32.mrb[36].mxu0 }
0x2470   :  { %v3150_v38 = vadd.f32 %v3141_v19, %v4410_v13  ;;  %v4013_v21 = vpop.f32.mrb[37].mxu0  ;;  %v3145_v25 = vadd.f32 %v3141_v19, %v3072_v23 }
0x2472   :  { %3152 = vrot.lane.b32.xlu0 %v3150_v38, %s4345_s29  ;;  %v3146_v26 = vmul.f32 0.5, %v3145_v25 }
0x2474   :  { %4303 = vtanh.f32 %v3146_v26 }
0x2477   :  { %v3311_v22 = vpop.f32.mrb[38].mxu0 }
0x2478   :  { %v4035_v20 = vpop.f32.mrb[39].mxu0  ;;  %v3320_v34 = vadd.f32 %v3311_v22, %v4451_v49 }
0x247e   :  { %v4304_v27 = vpop.eup %4303 }
0x247f   :  { %v3148_v28 = vmul.f32 0.5, %v4304_v27 }
0x2481   :  { %v3149_v29 = vadd.f32 0.5, %v3148_v28 }
0x2483   :  { %v3162_v4 = vsub.f32 1.0, %v3149_v29  ;;  %v3168_v37 = vmul.f32 %v3149_v29, %v4828_v51 }
0x24e4   :  { %v3153_v30 = vpop.permute.xlu0 %3152 }
0x24e5   :  { %v3155_v24 = vmul.f32 %v3153_v30, %v3149_v29 }
0x24e7   :  { %3157 = vrot.lane.b32.xlu1 %v3155_v24, %s4345_s29 }
0x2559   :  { %v3158_v32 = vpop.permute.xlu1 %3157 }
0x255a   :  { %v3160_v33 = vadd.f32 %v3158_v32, %v3072_v23 }
0x255c   :  { %4305 = vtanh.f32 %v3160_v33 }
0x2566   :  { %v4306_v13 = vpop.eup %4305 }
0x2567   :  { %3164 = vrot.lane.b32.xlu0 %v4306_v13, %s4346_s5 }
0x256b   :  { %3322 = vrot.lane.b32.xlu0 %v3320_v34, %s4345_s29 }
0x25d9   :  { %v3165_v36 = vpop.permute.xlu0 %3164 }
0x25da   :  { %v3167_v40 = vmul.f32 %v3165_v36, %v3162_v4 }
0x25dc   :  { %v3169_v41 = vadd.f32 %v3168_v37, %v3167_v40 }
0x25dd   :  { %v3323_v51 = vpop.permute.xlu0 %3322 }
0x25de   :  { %3171 = vrot.lane.b32.xlu1 %v3169_v41, %s4346_s5 }
0x2650   :  { %v3172_v42 = vpop.permute.xlu1 %3171 }
0x2651   :  { %4023 = vmatmul.mubr.msk.f32.vlgmr.msra.gmra.mrb[36].mxu1 %vm129_vm2, %v3172_v42 }
0x2652   :  { %4235 = vmatpush3.bf16.msra.mxu1 %v4465_v8  ;;  %4044 = vmatprep.mubr.msk.f32.mxu1 %vm4344_vm0, %v4343_v1 }
0x2653   :  { %4236 = vmatprep.subr.bf16.mxu1 %v4342_v0 }
0x2656   :  { %4238 = vmatpush3.bf16.msra.mxu1 %v4468_v11 }
0x2724   :  { %v3241_v49 = vpop.f32.mrb[36].mxu1 }
0x2725   :  { %v3242_v43 = vadd.f32 %v4842_v55, %v3241_v49  ;;  %v4024_v44 = vpop.f32.mrb[37].mxu1 }
0x2727   :  { %v3315_v45 = vadd.f32 %v3311_v22, %v3242_v43 }
0x2729   :  { %v3316_v47 = vmul.f32 0.5, %v3315_v45 }
0x272b   :  { %4307 = vtanh.f32 %v3316_v47 }
0x2735   :  { %v4308_v48 = vpop.eup %4307 }
0x2736   :  { %v3318_v17 = vmul.f32 0.5, %v4308_v48 }
0x2738   :  { %v3319_v50 = vadd.f32 0.5, %v3318_v17 }
0x273a   :  { %v3325_v53 = vmul.f32 %v3323_v51, %v3319_v50  ;;  %v3332_v11 = vsub.f32 1.0, %v3319_v50  ;;  %v3338_v55 = vmul.f32 %v3319_v50, %v4856_v15 }
0x273c   :  { %3327 = vrot.lane.b32.xlu1 %v3325_v53, %s4345_s29 }
0x27ae   :  { %v3328_v8 = vpop.permute.xlu1 %3327 }
0x27af   :  { %v3330_v1 = vadd.f32 %v3328_v8, %v3242_v43 }
0x27b1   :  { %4309 = vtanh.f32 %v3330_v1 }
0x27bb   :  { %v4310_v0 = vpop.eup %4309 }
0x27bc   :  { %3334 = vrot.lane.b32.xlu0 %v4310_v0, %s4346_s5 }
0x282e   :  { %v3335_v54 = vpop.permute.xlu0 %3334 }
0x282f   :  { %v3337_v56 = vmul.f32 %v3335_v54, %v3332_v11 }
0x2831   :  { %v3339_v57 = vadd.f32 %v3338_v55, %v3337_v56 }
0x2833   :  { %3341 = vrot.lane.b32.xlu1 %v3339_v57, %s4346_s5 }
0x28a5   :  { %v3342_v46 = vpop.permute.xlu1 %3341 }
0x28a6   :  { %4045 = vmatmul.mubr.msk.f32.vlgmr.msra.gmra.mrb[38].mxu1 %vm129_vm2, %v3342_v46 }
0x2979   :  { %v3411_v58 = vpop.f32.mrb[38].mxu1 }
0x297a   :  { %v3412_v59 = vadd.f32 %v4879_v10, %v3411_v58  ;;  %v4046_v60 = vpop.f32.mrb[39].mxu1 }
0x297c   :  { %3478 = vst [vmem:[%s4913_s3 + $0xe] sm:$0x3] %v3412_v59 }
0x297d   :  { %3421 = vsyncpa [#allocation3], 1 }

</bundles_post_ra>
